<compile_context>
chip_gen: v5e
topology: v5e:2x2
jax: 0.10.0
libtpu: 0.0.40
codegen_flags: <defaults>
</compile_context>

<pallas_src>
import functools

import jax
import jax.numpy as jnp
from jax.experimental import pallas as pl
from jax.experimental.pallas import tpu as pltpu

LANE = 128
BN_EPS = 1e-5
MATMUL_DTYPE = jnp.float32          # -> jnp.bfloat16 on v6e/v7x for 2x MXU rate
VMEM_LIMIT_BYTES = 32 * 1024 * 1024  # sized against v7x (64 MiB physical VMEM)


# ---------------------------------------------------------------------------
# helpers
# ---------------------------------------------------------------------------
def _round_up(n, m):
    return (n + m - 1) // m * m


def _pad_last(a, to):
    pad = to - a.shape[-1]
    if pad == 0:
        return a
    return jnp.pad(a, [(0, 0)] * (a.ndim - 1) + [(0, pad)])


def _pack_weight(w_hwio, cin_p, cout_p):
    """(3,3,Cin,Cout) -> zero-pad channels -> (9*cin_p, cout_p), row order
    matching the dy-major / dx-minor / cin-minor im2col concatenation."""
    kh, kw, cin, cout = w_hwio.shape
    w = jnp.pad(w_hwio, ((0, 0), (0, 0), (0, cin_p - cin), (0, cout_p - cout)))
    return w.reshape(kh * kw * cin_p, cout_p).astype(MATMUL_DTYPE)


def _bn_scale_shift(stats, count, gamma_p, beta_p):
    """Fold global batch statistics into per-channel scale/shift (tiny vectors)."""
    s = jnp.sum(stats[:, 0, :], axis=0)
    ss = jnp.sum(stats[:, 1, :], axis=0)
    mean = s / count
    var = ss / count - mean * mean
    scale = gamma_p * jax.lax.rsqrt(var + BN_EPS)
    shift = beta_p - mean * scale
    return scale.reshape(1, -1), shift.reshape(1, -1)


# ---------------------------------------------------------------------------
# in-kernel im2col 3x3 conv (single MXU matmul, K = 9 * Cin_padded)
# ---------------------------------------------------------------------------
def _im2col_conv3x3(pad_ref, w_ref, b_ref, ho, wo):
    cin_p = pad_ref.shape[-1]
    cols = [pad_ref[dy:dy + ho, dx:dx + wo, :].reshape(ho * wo, cin_p)
            for dy in range(3) for dx in range(3)]
    patches = jnp.concatenate(cols, axis=-1).astype(MATMUL_DTYPE)   # (ho*wo, 9*cin_p)
    acc = jnp.dot(patches, w_ref[...], preferred_element_type=jnp.float32)
    return acc + b_ref[...].astype(jnp.float32)                     # (ho*wo, cout_p)


def _emit_stats(acc, stats_ref):
    stats_ref[...] = jnp.concatenate(
        [jnp.sum(acc, axis=0, keepdims=True),
         jnp.sum(acc * acc, axis=0, keepdims=True)], axis=0)


# ---------------------------------------------------------------------------
# Kernel 1: fused maxpool(2x2) + conv1(3x3, pad=1) + bias + BN partial sums
#   x_ref : (H, Wo, 2*Cin_p)   W-pairs pre-folded into lanes (free reshape)
#   y_ref : (Ho, Wo, Cout_p)   raw conv output (pre-BN)
# ---------------------------------------------------------------------------
def _pool_conv_kernel(x_ref, w_ref, b_ref, y_ref, stats_ref, pad_ref):
    h, wo, two_cin = x_ref.shape
    cin_p = two_cin // 2
    ho = h // 2
    cout_p = y_ref.shape[-1]

    x = x_ref[...]
    xw = jnp.maximum(x[:, :, :cin_p], x[:, :, cin_p:])      # pool over W (lane slices)
    xh = xw.reshape(ho, 2, wo, cin_p)                        # split leading dim only
    pooled = jnp.maximum(xh[:, 0], xh[:, 1])                 # pool over H -> (ho, wo, cin_p)

    pad_ref[...] = jnp.zeros(pad_ref.shape, pad_ref.dtype)   # halo built in VMEM
    pad_ref[1:ho + 1, 1:wo + 1, :] = pooled.astype(pad_ref.dtype)

    acc = _im2col_conv3x3(pad_ref, w_ref, b_ref, ho, wo)     # (ho*wo, cout_p) f32
    y_ref[...] = acc.reshape(ho, wo, cout_p).astype(y_ref.dtype)
    _emit_stats(acc, stats_ref)


# ---------------------------------------------------------------------------
# Kernel 2: fused BN1-affine + ReLU + conv2(3x3, pad=1) + bias + BN partial sums
# ---------------------------------------------------------------------------
def _bnrelu_conv_kernel(y_ref, scale_ref, shift_ref, w_ref, b_ref,
                        o_ref, stats_ref, pad_ref):
    ho, wo, cp = y_ref.shape
    a = jnp.maximum(y_ref[...] * scale_ref[...] + shift_ref[...], 0.0)

    pad_ref[...] = jnp.zeros(pad_ref.shape, pad_ref.dtype)
    pad_ref[1:ho + 1, 1:wo + 1, :] = a.astype(pad_ref.dtype)

    acc = _im2col_conv3x3(pad_ref, w_ref, b_ref, ho, wo)
    o_ref[...] = acc.reshape(ho, wo, cp).astype(o_ref.dtype)
    _emit_stats(acc, stats_ref)


# ---------------------------------------------------------------------------
# Kernel 3: final BN2-affine + ReLU
# ---------------------------------------------------------------------------
def _bnrelu_kernel(y_ref, scale_ref, shift_ref, o_ref):
    o_ref[...] = jnp.maximum(
        y_ref[...] * scale_ref[...] + shift_ref[...], 0.0).astype(o_ref.dtype)


# ---------------------------------------------------------------------------
# pallas_call wrappers
# ---------------------------------------------------------------------------
def _compiler_params():
    return pltpu.CompilerParams(dimension_semantics=("parallel",),
                                vmem_limit_bytes=VMEM_LIMIT_BYTES)


def _pool_conv_call(x, w, b, cout_p):
    n, h, wo, two_cin = x.shape
    cin_p = two_cin // 2
    ho = h // 2
    return pl.pallas_call(
        _pool_conv_kernel,
        out_shape=(jax.ShapeDtypeStruct((n, ho, wo, cout_p), jnp.float32),
                   jax.ShapeDtypeStruct((n, 2, cout_p), jnp.float32)),
        grid_spec=pltpu.PrefetchScalarGridSpec(
            num_scalar_prefetch=0,
            grid=(n,),
            in_specs=[
                pl.BlockSpec((None, h, wo, two_cin), lambda i: (i, 0, 0, 0)),
                pl.BlockSpec((9 * cin_p, cout_p), lambda i: (0, 0)),   # resident
                pl.BlockSpec((1, cout_p), lambda i: (0, 0)),
            ],
            out_specs=[
                pl.BlockSpec((None, ho, wo, cout_p), lambda i: (i, 0, 0, 0)),
                pl.BlockSpec((None, 2, cout_p), lambda i: (i, 0, 0)),
            ],
            scratch_shapes=[pltpu.VMEM((ho + 2, wo + 2, cin_p), jnp.float32)],
        ),
        compiler_params=_compiler_params(),
    )(x, w, b)


def _bnrelu_conv_call(y, scale, shift, w, b):
    n, ho, wo, cp = y.shape
    return pl.pallas_call(
        _bnrelu_conv_kernel,
        out_shape=(jax.ShapeDtypeStruct((n, ho, wo, cp), jnp.float32),
                   jax.ShapeDtypeStruct((n, 2, cp), jnp.float32)),
        grid_spec=pltpu.PrefetchScalarGridSpec(
            num_scalar_prefetch=0,
            grid=(n,),
            in_specs=[
                pl.BlockSpec((None, ho, wo, cp), lambda i: (i, 0, 0, 0)),
                pl.BlockSpec((1, cp), lambda i: (0, 0)),
                pl.BlockSpec((1, cp), lambda i: (0, 0)),
                pl.BlockSpec((9 * cp, cp), lambda i: (0, 0)),          # resident
                pl.BlockSpec((1, cp), lambda i: (0, 0)),
            ],
            out_specs=[
                pl.BlockSpec((None, ho, wo, cp), lambda i: (i, 0, 0, 0)),
                pl.BlockSpec((None, 2, cp), lambda i: (i, 0, 0)),
            ],
            scratch_shapes=[pltpu.VMEM((ho + 2, wo + 2, cp), jnp.float32)],
        ),
        compiler_params=_compiler_params(),
    )(y, scale, shift, w, b)


def _bnrelu_call(y, scale, shift):
    n, ho, wo, cp = y.shape
    return pl.pallas_call(
        _bnrelu_kernel,
        out_shape=jax.ShapeDtypeStruct((n, ho, wo, cp), jnp.float32),
        grid_spec=pltpu.PrefetchScalarGridSpec(
            num_scalar_prefetch=0,
            grid=(n,),
            in_specs=[
                pl.BlockSpec((None, ho, wo, cp), lambda i: (i, 0, 0, 0)),
                pl.BlockSpec((1, cp), lambda i: (0, 0)),
                pl.BlockSpec((1, cp), lambda i: (0, 0)),
            ],
            out_specs=pl.BlockSpec((None, ho, wo, cp), lambda i: (i, 0, 0, 0)),
        ),
        compiler_params=_compiler_params(),
    )(y, scale, shift)


# ---------------------------------------------------------------------------
# DownSample forward: NCHW in -> maxpool 2x2 -> (conv+BN+ReLU) x2 -> NCHW out.
# ---------------------------------------------------------------------------
def downsample_forward(x_nchw, params):
    (w1, b1, g1, bt1), (w2, b2, g2, bt2) = params
    n, cin, h, w = x_nchw.shape
    cout = w1.shape[-1]
    assert h % 2 == 0 and w % 2 == 0, "MaxPool2d(2) path assumes even H, W"
    ho, wo = h // 2, w // 2
    cin_p = _round_up(cin, LANE)
    cp = _round_up(cout, LANE)

    # NCHW -> NHWC, pad channels to a lane multiple, fold W-pairs into lanes
    # (a free, row-major-compatible reshape -> lane-friendly fused maxpool).
    x = jnp.transpose(x_nchw, (0, 2, 3, 1)).astype(jnp.float32)
    x = _pad_last(x, cin_p).reshape(n, h, wo, 2 * cin_p)

    w1p = _pack_weight(w1, cin_p, cp)
    w2p = _pack_weight(w2, cp, cp)
    b1p = _pad_last(b1, cp).reshape(1, cp)
    b2p = _pad_last(b2, cp).reshape(1, cp)
    g1p, bt1p = _pad_last(g1, cp), _pad_last(bt1, cp)
    g2p, bt2p = _pad_last(g2, cp), _pad_last(bt2, cp)

    count = n * ho * wo

    y1, s1 = _pool_conv_call(x, w1p, b1p, cp)
    sc1, sh1 = _bn_scale_shift(s1, count, g1p, bt1p)
    y2, s2 = _bnrelu_conv_call(y1, sc1, sh1, w2p, b2p)
    sc2, sh2 = _bn_scale_shift(s2, count, g2p, bt2p)
    out = _bnrelu_call(y2, sc2, sh2)

    out = out[..., :cout]                      # drop lane padding
    return jnp.transpose(out, (0, 3, 1, 2))    # NHWC -> NCHW


def init_params(key, in_channels, out_channels):
    """Deterministic synthetic parameters for DoubleConv (two conv layers)."""
    params = []
    cin = in_channels
    for _ in range(2):
        key, kw, kb = jax.random.split(key, 3)
        w = 0.1 * jax.random.normal(kw, (3, 3, cin, out_channels), jnp.float32)
        b = 0.05 * jax.random.normal(kb, (out_channels,), jnp.float32)
        gamma = jnp.ones((out_channels,), jnp.float32)   # PyTorch BN defaults
        beta = jnp.zeros((out_channels,), jnp.float32)
        params.append((w, b, gamma, beta))
        cin = out_channels
    return params


# ---------------------------------------------------------------------------
# Pure-JAX reference (sanity check of the Pallas path).
# ---------------------------------------------------------------------------
def ref_forward(x_nchw, params):
    x = jnp.transpose(x_nchw, (0, 2, 3, 1))
    n, h, w, c = x.shape
    x = x.reshape(n, h // 2, 2, w // 2, 2, c).max(axis=(2, 4))
    for (wt, b, g, bt) in params:
        y = jax.lax.conv_general_dilated(
            x, wt, window_strides=(1, 1), padding="SAME",
            dimension_numbers=("NHWC", "HWIO", "NHWC"),
            precision=jax.lax.Precision.HIGHEST)
        y = y + b
        mean = y.mean(axis=(0, 1, 2), keepdims=True)
        var = jnp.square(y - mean).mean(axis=(0, 1, 2), keepdims=True)
        y = (y - mean) / jnp.sqrt(var + BN_EPS) * g + bt
        x = jnp.maximum(y, 0.0)
    return jnp.transpose(x, (0, 3, 1, 2))


if __name__ == "__main__":
    in_channels, out_channels = 4, 8
    key = jax.random.PRNGKey(0)
    kx, kp = jax.random.split(key)
    x = jax.random.normal(kx, (2, in_channels, 16, 16), jnp.float32)  # NCHW
    params = init_params(kp, in_channels, out_channels)

    fwd = jax.jit(downsample_forward)
    out = jax.block_until_ready(fwd(x, params))
    ref = jax.block_until_ready(ref_forward(x, params))

    assert out.shape == (2, out_channels, 8, 8), out.shape
    err = float(jnp.max(jnp.abs(out - ref)))
    assert err < 1e-2, err
    print("KERNEL_OK")
</pallas_src>

<mosaic_0001>
module attributes {stable_mosaic.version = 11 : i64} {
  func.func @_pool_conv_kernel(%arg0: i32, %arg1: memref<1x16x8x256xf32, #tpu.memory_space<vmem>>, %arg2: memref<1152x128xf32, #tpu.memory_space<vmem>>, %arg3: memref<1x128xf32, #tpu.memory_space<vmem>>, %arg4: memref<1x8x8x128xf32, #tpu.memory_space<vmem>>, %arg5: memref<1x2x128xf32, #tpu.memory_space<vmem>>, %arg6: memref<10x10x128xf32, #tpu.memory_space<vmem>>) attributes {dimension_semantics = [#tpu.dimension_semantics<parallel>], iteration_bounds = array<i64: 2>, scalar_prefetch = 0 : i64, scratch_operands = 1 : i64, tpu.core_type = #tpu.core_type<tc>, window_params = [{transform_indices = @transform_0, window_bounds = array<i64: 1, 16, 8, 256>}, {pipeline_mode = #tpu.pipeline_mode<synchronous>, transform_indices = @transform_1, window_bounds = array<i64: 1152, 128>}, {pipeline_mode = #tpu.pipeline_mode<synchronous>, transform_indices = @transform_2, window_bounds = array<i64: 1, 128>}, {transform_indices = @transform_3, window_bounds = array<i64: 1, 8, 8, 128>}, {transform_indices = @transform_4, window_bounds = array<i64: 1, 2, 128>}]} {
    %c0 = arith.constant 0 : index
    %c0_0 = arith.constant 0 : index
    %c0_1 = arith.constant 0 : index
    %c0_2 = arith.constant 0 : index
    %0 = vector.load %arg1[%c0, %c0_0, %c0_1, %c0_2] : memref<1x16x8x256xf32, #tpu.memory_space<vmem>>, vector<1x16x8x256xf32>
    %1 = vector.shape_cast %0 : vector<1x16x8x256xf32> to vector<16x8x256xf32>
    %2 = vector.extract_strided_slice %1 {offsets = [0, 0, 0], sizes = [16, 8, 128], strides = [1, 1, 1]} : vector<16x8x256xf32> to vector<16x8x128xf32>
    %3 = vector.extract_strided_slice %1 {offsets = [0, 0, 128], sizes = [16, 8, 128], strides = [1, 1, 1]} : vector<16x8x256xf32> to vector<16x8x128xf32>
    %4 = arith.maximumf %2, %3 : vector<16x8x128xf32>
    %5 = vector.shape_cast %4 : vector<16x8x128xf32> to vector<8x2x8x128xf32>
    %6 = vector.extract_strided_slice %5 {offsets = [0, 0, 0, 0], sizes = [8, 1, 8, 128], strides = [1, 1, 1, 1]} : vector<8x2x8x128xf32> to vector<8x1x8x128xf32>
    %7 = vector.shape_cast %6 : vector<8x1x8x128xf32> to vector<8x8x128xf32>
    %8 = vector.extract_strided_slice %5 {offsets = [0, 1, 0, 0], sizes = [8, 1, 8, 128], strides = [1, 1, 1, 1]} : vector<8x2x8x128xf32> to vector<8x1x8x128xf32>
    %9 = vector.shape_cast %8 : vector<8x1x8x128xf32> to vector<8x8x128xf32>
    %10 = arith.maximumf %7, %9 : vector<8x8x128xf32>
    %cst = arith.constant 0.000000e+00 : f32
    %11 = vector.broadcast %cst : f32 to vector<10x10x128xf32>
    %c0_3 = arith.constant 0 : index
    %c0_4 = arith.constant 0 : index
    %c0_5 = arith.constant 0 : index
    %12 = vector.load %arg6[%c0_3, %c0_4, %c0_5] : memref<10x10x128xf32, #tpu.memory_space<vmem>>, vector<10x10x128xf32>
    tpu.vector_store %arg6[%c0_3, %c0_4, %c0_5], %11 {strides = array<i32>} : memref<10x10x128xf32, #tpu.memory_space<vmem>>, vector<10x10x128xf32>,
    %c1 = arith.constant 1 : index
    %c1_6 = arith.constant 1 : index
    %c0_7 = arith.constant 0 : index
    %13 = vector.load %arg6[%c1, %c1_6, %c0_7] : memref<10x10x128xf32, #tpu.memory_space<vmem>>, vector<8x8x128xf32>
    tpu.vector_store %arg6[%c1, %c1_6, %c0_7], %10 {strides = array<i32>} : memref<10x10x128xf32, #tpu.memory_space<vmem>>, vector<8x8x128xf32>,
    %c0_8 = arith.constant 0 : index
    %c0_9 = arith.constant 0 : index
    %c0_10 = arith.constant 0 : index
    %14 = vector.load %arg6[%c0_8, %c0_9, %c0_10] : memref<10x10x128xf32, #tpu.memory_space<vmem>>, vector<8x8x128xf32>
    %15 = vector.shape_cast %14 : vector<8x8x128xf32> to vector<64x128xf32>
    %c0_11 = arith.constant 0 : index
    %c1_12 = arith.constant 1 : index
    %c0_13 = arith.constant 0 : index
    %16 = vector.load %arg6[%c0_11, %c1_12, %c0_13] : memref<10x10x128xf32, #tpu.memory_space<vmem>>, vector<8x8x128xf32>
    %17 = vector.shape_cast %16 : vector<8x8x128xf32> to vector<64x128xf32>
    %c0_14 = arith.constant 0 : index
    %c2 = arith.constant 2 : index
    %c0_15 = arith.constant 0 : index
    %18 = vector.load %arg6[%c0_14, %c2, %c0_15] : memref<10x10x128xf32, #tpu.memory_space<vmem>>, vector<8x8x128xf32>
    %19 = vector.shape_cast %18 : vector<8x8x128xf32> to vector<64x128xf32>
    %c1_16 = arith.constant 1 : index
    %c0_17 = arith.constant 0 : index
    %c0_18 = arith.constant 0 : index
    %20 = vector.load %arg6[%c1_16, %c0_17, %c0_18] : memref<10x10x128xf32, #tpu.memory_space<vmem>>, vector<8x8x128xf32>
    %21 = vector.shape_cast %20 : vector<8x8x128xf32> to vector<64x128xf32>
    %c1_19 = arith.constant 1 : index
    %c1_20 = arith.constant 1 : index
    %c0_21 = arith.constant 0 : index
    %22 = vector.load %arg6[%c1_19, %c1_20, %c0_21] : memref<10x10x128xf32, #tpu.memory_space<vmem>>, vector<8x8x128xf32>
    %23 = vector.shape_cast %22 : vector<8x8x128xf32> to vector<64x128xf32>
    %c1_22 = arith.constant 1 : index
    %c2_23 = arith.constant 2 : index
    %c0_24 = arith.constant 0 : index
    %24 = vector.load %arg6[%c1_22, %c2_23, %c0_24] : memref<10x10x128xf32, #tpu.memory_space<vmem>>, vector<8x8x128xf32>
    %25 = vector.shape_cast %24 : vector<8x8x128xf32> to vector<64x128xf32>
    %c2_25 = arith.constant 2 : index
    %c0_26 = arith.constant 0 : index
    %c0_27 = arith.constant 0 : index
    %26 = vector.load %arg6[%c2_25, %c0_26, %c0_27] : memref<10x10x128xf32, #tpu.memory_space<vmem>>, vector<8x8x128xf32>
    %27 = vector.shape_cast %26 : vector<8x8x128xf32> to vector<64x128xf32>
    %c2_28 = arith.constant 2 : index
    %c1_29 = arith.constant 1 : index
    %c0_30 = arith.constant 0 : index
    %28 = vector.load %arg6[%c2_28, %c1_29, %c0_30] : memref<10x10x128xf32, #tpu.memory_space<vmem>>, vector<8x8x128xf32>
    %29 = vector.shape_cast %28 : vector<8x8x128xf32> to vector<64x128xf32>
    %c2_31 = arith.constant 2 : index
    %c2_32 = arith.constant 2 : index
    %c0_33 = arith.constant 0 : index
    %30 = vector.load %arg6[%c2_31, %c2_32, %c0_33] : memref<10x10x128xf32, #tpu.memory_space<vmem>>, vector<8x8x128xf32>
    %31 = vector.shape_cast %30 : vector<8x8x128xf32> to vector<64x128xf32>
    %32 = tpu.concatenate %15, %17, %19, %21, %23, %25, %27, %29, %31 in 1 : vector<64x128xf32>, vector<64x128xf32>, vector<64x128xf32>, vector<64x128xf32>, vector<64x128xf32>, vector<64x128xf32>, vector<64x128xf32>, vector<64x128xf32>, vector<64x128xf32> -> vector<64x1152xf32>
    %c0_34 = arith.constant 0 : index
    %c0_35 = arith.constant 0 : index
    %33 = vector.load %arg2[%c0_34, %c0_35] : memref<1152x128xf32, #tpu.memory_space<vmem>>, vector<1152x128xf32>
    %cst_36 = arith.constant dense<0.000000e+00> : vector<64x128xf32>
    %34 = tpu.matmul %32, %33, %cst_36 {dimension_numbers = #tpu.dot_dimension_numbers<[1], [0], [0], [1], [0, 0, 1, 1], [], []>} : vector<64x1152xf32>, vector<1152x128xf32>, vector<64x128xf32> -> vector<64x128xf32>
    %c0_37 = arith.constant 0 : index
    %c0_38 = arith.constant 0 : index
    %35 = vector.load %arg3[%c0_37, %c0_38] : memref<1x128xf32, #tpu.memory_space<vmem>>, vector<1x128xf32>
    %36 = vector.broadcast %35 : vector<1x128xf32> to vector<64x128xf32>
    %37 = arith.addf %34, %36 : vector<64x128xf32>
    %38 = vector.shape_cast %37 : vector<64x128xf32> to vector<8x8x128xf32>
    %c0_39 = arith.constant 0 : index
    %c0_40 = arith.constant 0 : index
    %c0_41 = arith.constant 0 : index
    %c0_42 = arith.constant 0 : index
    %39 = vector.load %arg4[%c0_39, %c0_40, %c0_41, %c0_42] : memref<1x8x8x128xf32, #tpu.memory_space<vmem>>, vector<1x8x8x128xf32>
    %40 = vector.shape_cast %39 : vector<1x8x8x128xf32> to vector<8x8x128xf32>
    %41 = vector.shape_cast %38 : vector<8x8x128xf32> to vector<1x8x8x128xf32>
    tpu.vector_store %arg4[%c0_39, %c0_40, %c0_41, %c0_42], %41 {strides = array<i32>} : memref<1x8x8x128xf32, #tpu.memory_space<vmem>>, vector<1x8x8x128xf32>,
    %cst_43 = arith.constant dense<0.000000e+00> : vector<128xf32>
    %42 = vector.multi_reduction <add>, %37, %cst_43 [0] : vector<64x128xf32> to vector<128xf32>
    %43 = vector.shape_cast %42 : vector<128xf32> to vector<1x128xf32>
    %44 = arith.mulf %37, %37 : vector<64x128xf32>
    %cst_44 = arith.constant dense<0.000000e+00> : vector<128xf32>
    %45 = vector.multi_reduction <add>, %44, %cst_44 [0] : vector<64x128xf32> to vector<128xf32>
    %46 = vector.shape_cast %45 : vector<128xf32> to vector<1x128xf32>
    %47 = tpu.concatenate %43, %46 in 0 : vector<1x128xf32>, vector<1x128xf32> -> vector<2x128xf32>
    %c0_45 = arith.constant 0 : index
    %c0_46 = arith.constant 0 : index
    %c0_47 = arith.constant 0 : index
    %48 = vector.load %arg5[%c0_45, %c0_46, %c0_47] : memref<1x2x128xf32, #tpu.memory_space<vmem>>, vector<1x2x128xf32>
    %49 = vector.shape_cast %48 : vector<1x2x128xf32> to vector<2x128xf32>
    %50 = vector.shape_cast %47 : vector<2x128xf32> to vector<1x2x128xf32>
    tpu.vector_store %arg5[%c0_45, %c0_46, %c0_47], %50 {strides = array<i32>} : memref<1x2x128xf32, #tpu.memory_space<vmem>>, vector<1x2x128xf32>,
    return
  }
  func.func @transform_0(%arg0: i32) -> (i32, i32, i32, i32) {
    %c0_i32 = arith.constant 0 : i32
    %c0_i32_0 = arith.constant 0 : i32
    %c0_i32_1 = arith.constant 0 : i32
    %c0_i32_2 = arith.constant 0 : i32
    return %arg0, %c0_i32, %c0_i32_0, %c0_i32_1 : i32, i32, i32, i32
  }
  func.func @transform_1(%arg0: i32) -> (i32, i32) {
    %c0_i32 = arith.constant 0 : i32
    %c0_i32_0 = arith.constant 0 : i32
    %c0_i32_1 = arith.constant 0 : i32
    return %c0_i32, %c0_i32_0 : i32, i32
  }
  func.func @transform_2(%arg0: i32) -> (i32, i32) {
    %c0_i32 = arith.constant 0 : i32
    %c0_i32_0 = arith.constant 0 : i32
    %c0_i32_1 = arith.constant 0 : i32
    return %c0_i32, %c0_i32_0 : i32, i32
  }
  func.func @transform_3(%arg0: i32) -> (i32, i32, i32, i32) {
    %c0_i32 = arith.constant 0 : i32
    %c0_i32_0 = arith.constant 0 : i32
    %c0_i32_1 = arith.constant 0 : i32
    %c0_i32_2 = arith.constant 0 : i32
    return %arg0, %c0_i32, %c0_i32_0, %c0_i32_1 : i32, i32, i32, i32
  }
  func.func @transform_4(%arg0: i32) -> (i32, i32, i32) {
    %c0_i32 = arith.constant 0 : i32
    %c0_i32_0 = arith.constant 0 : i32
    %c0_i32_1 = arith.constant 0 : i32
    return %arg0, %c0_i32, %c0_i32_0 : i32, i32, i32
  }
}

module attributes {stable_mosaic.version = 11 : i64} {
  func.func @_bnrelu_conv_kernel(%arg0: i32, %arg1: memref<1x8x8x128xf32, #tpu.memory_space<vmem>>, %arg2: memref<1x128xf32, #tpu.memory_space<vmem>>, %arg3: memref<1x128xf32, #tpu.memory_space<vmem>>, %arg4: memref<1152x128xf32, #tpu.memory_space<vmem>>, %arg5: memref<1x128xf32, #tpu.memory_space<vmem>>, %arg6: memref<1x8x8x128xf32, #tpu.memory_space<vmem>>, %arg7: memref<1x2x128xf32, #tpu.memory_space<vmem>>, %arg8: memref<10x10x128xf32, #tpu.memory_space<vmem>>) attributes {dimension_semantics = [#tpu.dimension_semantics<parallel>], iteration_bounds = array<i64: 2>, scalar_prefetch = 0 : i64, scratch_operands = 1 : i64, tpu.core_type = #tpu.core_type<tc>, window_params = [{transform_indices = @transform_0, window_bounds = array<i64: 1, 8, 8, 128>}, {pipeline_mode = #tpu.pipeline_mode<synchronous>, transform_indices = @transform_1, window_bounds = array<i64: 1, 128>}, {pipeline_mode = #tpu.pipeline_mode<synchronous>, transform_indices = @transform_2, window_bounds = array<i64: 1, 128>}, {pipeline_mode = #tpu.pipeline_mode<synchronous>, transform_indices = @transform_3, window_bounds = array<i64: 1152, 128>}, {pipeline_mode = #tpu.pipeline_mode<synchronous>, transform_indices = @transform_4, window_bounds = array<i64: 1, 128>}, {transform_indices = @transform_5, window_bounds = array<i64: 1, 8, 8, 128>}, {transform_indices = @transform_6, window_bounds = array<i64: 1, 2, 128>}]} {
    %c0 = arith.constant 0 : index
    %c0_0 = arith.constant 0 : index
    %c0_1 = arith.constant 0 : index
    %c0_2 = arith.constant 0 : index
    %0 = vector.load %arg1[%c0, %c0_0, %c0_1, %c0_2] : memref<1x8x8x128xf32, #tpu.memory_space<vmem>>, vector<1x8x8x128xf32>
    %1 = vector.shape_cast %0 : vector<1x8x8x128xf32> to vector<8x8x128xf32>
    %c0_3 = arith.constant 0 : index
    %c0_4 = arith.constant 0 : index
    %2 = vector.load %arg2[%c0_3, %c0_4] : memref<1x128xf32, #tpu.memory_space<vmem>>, vector<1x128xf32>
    %3 = vector.shape_cast %2 : vector<1x128xf32> to vector<1x1x128xf32>
    %4 = vector.broadcast %3 : vector<1x1x128xf32> to vector<8x8x128xf32>
    %5 = arith.mulf %1, %4 : vector<8x8x128xf32>
    %c0_5 = arith.constant 0 : index
    %c0_6 = arith.constant 0 : index
    %6 = vector.load %arg3[%c0_5, %c0_6] : memref<1x128xf32, #tpu.memory_space<vmem>>, vector<1x128xf32>
    %7 = vector.shape_cast %6 : vector<1x128xf32> to vector<1x1x128xf32>
    %8 = vector.broadcast %7 : vector<1x1x128xf32> to vector<8x8x128xf32>
    %9 = arith.addf %5, %8 : vector<8x8x128xf32>
    %cst = arith.constant 0.000000e+00 : f32
    %10 = vector.broadcast %cst : f32 to vector<8x8x128xf32>
    %11 = arith.maximumf %9, %10 : vector<8x8x128xf32>
    %cst_7 = arith.constant 0.000000e+00 : f32
    %12 = vector.broadcast %cst_7 : f32 to vector<10x10x128xf32>
    %c0_8 = arith.constant 0 : index
    %c0_9 = arith.constant 0 : index
    %c0_10 = arith.constant 0 : index
    %13 = vector.load %arg8[%c0_8, %c0_9, %c0_10] : memref<10x10x128xf32, #tpu.memory_space<vmem>>, vector<10x10x128xf32>
    tpu.vector_store %arg8[%c0_8, %c0_9, %c0_10], %12 {strides = array<i32>} : memref<10x10x128xf32, #tpu.memory_space<vmem>>, vector<10x10x128xf32>,
    %c1 = arith.constant 1 : index
    %c1_11 = arith.constant 1 : index
    %c0_12 = arith.constant 0 : index
    %14 = vector.load %arg8[%c1, %c1_11, %c0_12] : memref<10x10x128xf32, #tpu.memory_space<vmem>>, vector<8x8x128xf32>
    tpu.vector_store %arg8[%c1, %c1_11, %c0_12], %11 {strides = array<i32>} : memref<10x10x128xf32, #tpu.memory_space<vmem>>, vector<8x8x128xf32>,
    %c0_13 = arith.constant 0 : index
    %c0_14 = arith.constant 0 : index
    %c0_15 = arith.constant 0 : index
    %15 = vector.load %arg8[%c0_13, %c0_14, %c0_15] : memref<10x10x128xf32, #tpu.memory_space<vmem>>, vector<8x8x128xf32>
    %16 = vector.shape_cast %15 : vector<8x8x128xf32> to vector<64x128xf32>
    %c0_16 = arith.constant 0 : index
    %c1_17 = arith.constant 1 : index
    %c0_18 = arith.constant 0 : index
    %17 = vector.load %arg8[%c0_16, %c1_17, %c0_18] : memref<10x10x128xf32, #tpu.memory_space<vmem>>, vector<8x8x128xf32>
    %18 = vector.shape_cast %17 : vector<8x8x128xf32> to vector<64x128xf32>
    %c0_19 = arith.constant 0 : index
    %c2 = arith.constant 2 : index
    %c0_20 = arith.constant 0 : index
    %19 = vector.load %arg8[%c0_19, %c2, %c0_20] : memref<10x10x128xf32, #tpu.memory_space<vmem>>, vector<8x8x128xf32>
    %20 = vector.shape_cast %19 : vector<8x8x128xf32> to vector<64x128xf32>
    %c1_21 = arith.constant 1 : index
    %c0_22 = arith.constant 0 : index
    %c0_23 = arith.constant 0 : index
    %21 = vector.load %arg8[%c1_21, %c0_22, %c0_23] : memref<10x10x128xf32, #tpu.memory_space<vmem>>, vector<8x8x128xf32>
    %22 = vector.shape_cast %21 : vector<8x8x128xf32> to vector<64x128xf32>
    %c1_24 = arith.constant 1 : index
    %c1_25 = arith.constant 1 : index
    %c0_26 = arith.constant 0 : index
    %23 = vector.load %arg8[%c1_24, %c1_25, %c0_26] : memref<10x10x128xf32, #tpu.memory_space<vmem>>, vector<8x8x128xf32>
    %24 = vector.shape_cast %23 : vector<8x8x128xf32> to vector<64x128xf32>
    %c1_27 = arith.constant 1 : index
    %c2_28 = arith.constant 2 : index
    %c0_29 = arith.constant 0 : index
    %25 = vector.load %arg8[%c1_27, %c2_28, %c0_29] : memref<10x10x128xf32, #tpu.memory_space<vmem>>, vector<8x8x128xf32>
    %26 = vector.shape_cast %25 : vector<8x8x128xf32> to vector<64x128xf32>
    %c2_30 = arith.constant 2 : index
    %c0_31 = arith.constant 0 : index
    %c0_32 = arith.constant 0 : index
    %27 = vector.load %arg8[%c2_30, %c0_31, %c0_32] : memref<10x10x128xf32, #tpu.memory_space<vmem>>, vector<8x8x128xf32>
    %28 = vector.shape_cast %27 : vector<8x8x128xf32> to vector<64x128xf32>
    %c2_33 = arith.constant 2 : index
    %c1_34 = arith.constant 1 : index
    %c0_35 = arith.constant 0 : index
    %29 = vector.load %arg8[%c2_33, %c1_34, %c0_35] : memref<10x10x128xf32, #tpu.memory_space<vmem>>, vector<8x8x128xf32>
    %30 = vector.shape_cast %29 : vector<8x8x128xf32> to vector<64x128xf32>
    %c2_36 = arith.constant 2 : index
    %c2_37 = arith.constant 2 : index
    %c0_38 = arith.constant 0 : index
    %31 = vector.load %arg8[%c2_36, %c2_37, %c0_38] : memref<10x10x128xf32, #tpu.memory_space<vmem>>, vector<8x8x128xf32>
    %32 = vector.shape_cast %31 : vector<8x8x128xf32> to vector<64x128xf32>
    %33 = tpu.concatenate %16, %18, %20, %22, %24, %26, %28, %30, %32 in 1 : vector<64x128xf32>, vector<64x128xf32>, vector<64x128xf32>, vector<64x128xf32>, vector<64x128xf32>, vector<64x128xf32>, vector<64x128xf32>, vector<64x128xf32>, vector<64x128xf32> -> vector<64x1152xf32>
    %c0_39 = arith.constant 0 : index
    %c0_40 = arith.constant 0 : index
    %34 = vector.load %arg4[%c0_39, %c0_40] : memref<1152x128xf32, #tpu.memory_space<vmem>>, vector<1152x128xf32>
    %cst_41 = arith.constant dense<0.000000e+00> : vector<64x128xf32>
    %35 = tpu.matmul %33, %34, %cst_41 {dimension_numbers = #tpu.dot_dimension_numbers<[1], [0], [0], [1], [0, 0, 1, 1], [], []>} : vector<64x1152xf32>, vector<1152x128xf32>, vector<64x128xf32> -> vector<64x128xf32>
    %c0_42 = arith.constant 0 : index
    %c0_43 = arith.constant 0 : index
    %36 = vector.load %arg5[%c0_42, %c0_43] : memref<1x128xf32, #tpu.memory_space<vmem>>, vector<1x128xf32>
    %37 = vector.broadcast %36 : vector<1x128xf32> to vector<64x128xf32>
    %38 = arith.addf %35, %37 : vector<64x128xf32>
    %39 = vector.shape_cast %38 : vector<64x128xf32> to vector<8x8x128xf32>
    %c0_44 = arith.constant 0 : index
    %c0_45 = arith.constant 0 : index
    %c0_46 = arith.constant 0 : index
    %c0_47 = arith.constant 0 : index
    %40 = vector.load %arg6[%c0_44, %c0_45, %c0_46, %c0_47] : memref<1x8x8x128xf32, #tpu.memory_space<vmem>>, vector<1x8x8x128xf32>
    %41 = vector.shape_cast %40 : vector<1x8x8x128xf32> to vector<8x8x128xf32>
    %42 = vector.shape_cast %39 : vector<8x8x128xf32> to vector<1x8x8x128xf32>
    tpu.vector_store %arg6[%c0_44, %c0_45, %c0_46, %c0_47], %42 {strides = array<i32>} : memref<1x8x8x128xf32, #tpu.memory_space<vmem>>, vector<1x8x8x128xf32>,
    %cst_48 = arith.constant dense<0.000000e+00> : vector<128xf32>
    %43 = vector.multi_reduction <add>, %38, %cst_48 [0] : vector<64x128xf32> to vector<128xf32>
    %44 = vector.shape_cast %43 : vector<128xf32> to vector<1x128xf32>
    %45 = arith.mulf %38, %38 : vector<64x128xf32>
    %cst_49 = arith.constant dense<0.000000e+00> : vector<128xf32>
    %46 = vector.multi_reduction <add>, %45, %cst_49 [0] : vector<64x128xf32> to vector<128xf32>
    %47 = vector.shape_cast %46 : vector<128xf32> to vector<1x128xf32>
    %48 = tpu.concatenate %44, %47 in 0 : vector<1x128xf32>, vector<1x128xf32> -> vector<2x128xf32>
    %c0_50 = arith.constant 0 : index
    %c0_51 = arith.constant 0 : index
    %c0_52 = arith.constant 0 : index
    %49 = vector.load %arg7[%c0_50, %c0_51, %c0_52] : memref<1x2x128xf32, #tpu.memory_space<vmem>>, vector<1x2x128xf32>
    %50 = vector.shape_cast %49 : vector<1x2x128xf32> to vector<2x128xf32>
    %51 = vector.shape_cast %48 : vector<2x128xf32> to vector<1x2x128xf32>
    tpu.vector_store %arg7[%c0_50, %c0_51, %c0_52], %51 {strides = array<i32>} : memref<1x2x128xf32, #tpu.memory_space<vmem>>, vector<1x2x128xf32>,
    return
  }
  func.func @transform_0(%arg0: i32) -> (i32, i32, i32, i32) {
    %c0_i32 = arith.constant 0 : i32
    %c0_i32_0 = arith.constant 0 : i32
    %c0_i32_1 = arith.constant 0 : i32
    %c0_i32_2 = arith.constant 0 : i32
    return %arg0, %c0_i32, %c0_i32_0, %c0_i32_1 : i32, i32, i32, i32
  }
  func.func @transform_1(%arg0: i32) -> (i32, i32) {
    %c0_i32 = arith.constant 0 : i32
    %c0_i32_0 = arith.constant 0 : i32
    %c0_i32_1 = arith.constant 0 : i32
    return %c0_i32, %c0_i32_0 : i32, i32
  }
  func.func @transform_2(%arg0: i32) -> (i32, i32) {
    %c0_i32 = arith.constant 0 : i32
    %c0_i32_0 = arith.constant 0 : i32
    %c0_i32_1 = arith.constant 0 : i32
    return %c0_i32, %c0_i32_0 : i32, i32
  }
  func.func @transform_3(%arg0: i32) -> (i32, i32) {
    %c0_i32 = arith.constant 0 : i32
    %c0_i32_0 = arith.constant 0 : i32
    %c0_i32_1 = arith.constant 0 : i32
    return %c0_i32, %c0_i32_0 : i32, i32
  }
  func.func @transform_4(%arg0: i32) -> (i32, i32) {
    %c0_i32 = arith.constant 0 : i32
    %c0_i32_0 = arith.constant 0 : i32
    %c0_i32_1 = arith.constant 0 : i32
    return %c0_i32, %c0_i32_0 : i32, i32
  }
  func.func @transform_5(%arg0: i32) -> (i32, i32, i32, i32) {
    %c0_i32 = arith.constant 0 : i32
    %c0_i32_0 = arith.constant 0 : i32
    %c0_i32_1 = arith.constant 0 : i32
    %c0_i32_2 = arith.constant 0 : i32
    return %arg0, %c0_i32, %c0_i32_0, %c0_i32_1 : i32, i32, i32, i32
  }
  func.func @transform_6(%arg0: i32) -> (i32, i32, i32) {
    %c0_i32 = arith.constant 0 : i32
    %c0_i32_0 = arith.constant 0 : i32
    %c0_i32_1 = arith.constant 0 : i32
    return %arg0, %c0_i32, %c0_i32_0 : i32, i32, i32
  }
}

module attributes {stable_mosaic.version = 11 : i64} {
  func.func @_bnrelu_kernel(%arg0: i32, %arg1: memref<1x8x8x128xf32, #tpu.memory_space<vmem>>, %arg2: memref<1x128xf32, #tpu.memory_space<vmem>>, %arg3: memref<1x128xf32, #tpu.memory_space<vmem>>, %arg4: memref<1x8x8x128xf32, #tpu.memory_space<vmem>>) attributes {dimension_semantics = [#tpu.dimension_semantics<parallel>], iteration_bounds = array<i64: 2>, scalar_prefetch = 0 : i64, scratch_operands = 0 : i64, tpu.core_type = #tpu.core_type<tc>, window_params = [{transform_indices = @transform_0, window_bounds = array<i64: 1, 8, 8, 128>}, {pipeline_mode = #tpu.pipeline_mode<synchronous>, transform_indices = @transform_1, window_bounds = array<i64: 1, 128>}, {pipeline_mode = #tpu.pipeline_mode<synchronous>, transform_indices = @transform_2, window_bounds = array<i64: 1, 128>}, {transform_indices = @transform_3, window_bounds = array<i64: 1, 8, 8, 128>}]} {
    %c0 = arith.constant 0 : index
    %c0_0 = arith.constant 0 : index
    %c0_1 = arith.constant 0 : index
    %c0_2 = arith.constant 0 : index
    %0 = vector.load %arg1[%c0, %c0_0, %c0_1, %c0_2] : memref<1x8x8x128xf32, #tpu.memory_space<vmem>>, vector<1x8x8x128xf32>
    %1 = vector.shape_cast %0 : vector<1x8x8x128xf32> to vector<8x8x128xf32>
    %c0_3 = arith.constant 0 : index
    %c0_4 = arith.constant 0 : index
    %2 = vector.load %arg2[%c0_3, %c0_4] : memref<1x128xf32, #tpu.memory_space<vmem>>, vector<1x128xf32>
    %3 = vector.shape_cast %2 : vector<1x128xf32> to vector<1x1x128xf32>
    %4 = vector.broadcast %3 : vector<1x1x128xf32> to vector<8x8x128xf32>
    %5 = arith.mulf %1, %4 : vector<8x8x128xf32>
    %c0_5 = arith.constant 0 : index
    %c0_6 = arith.constant 0 : index
    %6 = vector.load %arg3[%c0_5, %c0_6] : memref<1x128xf32, #tpu.memory_space<vmem>>, vector<1x128xf32>
    %7 = vector.shape_cast %6 : vector<1x128xf32> to vector<1x1x128xf32>
    %8 = vector.broadcast %7 : vector<1x1x128xf32> to vector<8x8x128xf32>
    %9 = arith.addf %5, %8 : vector<8x8x128xf32>
    %cst = arith.constant 0.000000e+00 : f32
    %10 = vector.broadcast %cst : f32 to vector<8x8x128xf32>
    %11 = arith.maximumf %9, %10 : vector<8x8x128xf32>
    %c0_7 = arith.constant 0 : index
    %c0_8 = arith.constant 0 : index
    %c0_9 = arith.constant 0 : index
    %c0_10 = arith.constant 0 : index
    %12 = vector.load %arg4[%c0_7, %c0_8, %c0_9, %c0_10] : memref<1x8x8x128xf32, #tpu.memory_space<vmem>>, vector<1x8x8x128xf32>
    %13 = vector.shape_cast %12 : vector<1x8x8x128xf32> to vector<8x8x128xf32>
    %14 = vector.shape_cast %11 : vector<8x8x128xf32> to vector<1x8x8x128xf32>
    tpu.vector_store %arg4[%c0_7, %c0_8, %c0_9, %c0_10], %14 {strides = array<i32>} : memref<1x8x8x128xf32, #tpu.memory_space<vmem>>, vector<1x8x8x128xf32>,
    return
  }
  func.func @transform_0(%arg0: i32) -> (i32, i32, i32, i32) {
    %c0_i32 = arith.constant 0 : i32
    %c0_i32_0 = arith.constant 0 : i32
    %c0_i32_1 = arith.constant 0 : i32
    %c0_i32_2 = arith.constant 0 : i32
    return %arg0, %c0_i32, %c0_i32_0, %c0_i32_1 : i32, i32, i32, i32
  }
  func.func @transform_1(%arg0: i32) -> (i32, i32) {
    %c0_i32 = arith.constant 0 : i32
    %c0_i32_0 = arith.constant 0 : i32
    %c0_i32_1 = arith.constant 0 : i32
    return %c0_i32, %c0_i32_0 : i32, i32
  }
  func.func @transform_2(%arg0: i32) -> (i32, i32) {
    %c0_i32 = arith.constant 0 : i32
    %c0_i32_0 = arith.constant 0 : i32
    %c0_i32_1 = arith.constant 0 : i32
    return %c0_i32, %c0_i32_0 : i32, i32
  }
  func.func @transform_3(%arg0: i32) -> (i32, i32, i32, i32) {
    %c0_i32 = arith.constant 0 : i32
    %c0_i32_0 = arith.constant 0 : i32
    %c0_i32_1 = arith.constant 0 : i32
    %c0_i32_2 = arith.constant 0 : i32
    return %arg0, %c0_i32, %c0_i32_0, %c0_i32_1 : i32, i32, i32, i32
  }
}

</mosaic_0001>

<bundles_post_ra>
// kernel: downsample_forward.5
= control target key start
LH: loop header
LB: loop body
LE: loop exit
PB: predicated region body
PF: predicated region fallthrough
CT: control target
= control target key end

     0   :  { %s325_s12 = smov 0   ;;  %s348_s0 = inlined_call_operand.vmem [shape: f32[2,8,8,128], index: 0, kind: input, shape index: {}]   ;;  %s349_s1 = inlined_call_operand.vmem [shape: f32[1,128], index: 1, kind: input, shape index: {}]   ;;  %s350_s2 = inlined_call_operand.vmem [shape: f32[1,128], index: 2, kind: input, shape index: {}]   ;;  %s351_s3 = inlined_call_operand.vmem [shape: f32[2,8,8,128], index: 3, kind: output, shape index: {}]  }
   0x1 LB: > { %s274_s13 = sadd.s32 4294967295, %s303_s12   ;;  %p278_p0 = scmp.ge.s32.totalorder %s303_s12, 1  ;;  %s303_s12 = sphi %s325_s12, %s13_s12  }
   0x2   : > { %p137_p1 = scmp.lt.s32.totalorder %s303_s12, 3 }
   0x4   : > { %p138_p2 = pnand %p278_p0, %p137_p1 }
   0x5   : > { %p161_p3 = scmp.lt.s32.totalorder (!%p138_p2), %s274_s13, 1 }
   0x6   : > { %141 = sbr.rel (%p138_p2) target bundleno = 29 (0x1d), region = 32 }
   0xb   : > { %s353_s13 = smov (!%p161_p3, %s274_s13), 1  ;;  %v295_v0 = vld [vmem:[%s349_s1] ss:$0 sm:$0xff] }
   0xc   : > { %s285_s16 = sshll.u32 %s353_s13, 6  ;;  %v296_v1 = vld [vmem:[%s350_s2] ss:$0 sm:$0xff] }
   0xd   : > { %s165_s19 = scalar_lea.vmem %s348_s0, %s285_s16  ;;  %s170_s24 = scalar_lea.vmem %s351_s3, %s285_s16 }
   0xe   : > { %v171_v2 = vld [vmem:[%s165_s19] sm:$0xff]  ;;  %v172_v3 = vld [vmem:[%s165_s19 + $0x8] sm:$0xff]  ;;  %v173_v4 = vld [vmem:[%s165_s19 + $0x10] sm:$0xff] }
   0xf   : > { %v183_v5 = vmul.f32 %v295_v0, %v171_v2  ;;  %v184_v6 = vmul.f32 %v295_v0, %v172_v3  ;;  %v185_v7 = vmul.f32 %v295_v0, %v173_v4  ;;  %v174_v8 = vld [vmem:[%s165_s19 + $0x18] sm:$0xff]  ;;  %v175_v9 = vld [vmem:[%s165_s19 + $0x20] sm:$0xff]  ;;  %v176_v10 = vld [vmem:[%s165_s19 + $0x28] sm:$0xff] }
  0x10   : > { %v186_v11 = vmul.f32 %v295_v0, %v174_v8  ;;  %v187_v12 = vmul.f32 %v295_v0, %v175_v9  ;;  %v188_v13 = vmul.f32 %v295_v0, %v176_v10  ;;  %v177_v14 = vld [vmem:[%s165_s19 + $0x30] sm:$0xff]  ;;  %v178_v15 = vld [vmem:[%s165_s19 + $0x38] sm:$0xff] }
  0x11   : > { %v195_v16 = vadd.f32 %v296_v1, %v183_v5  ;;  %v196_v17 = vadd.f32 %v296_v1, %v184_v6  ;;  %v197_v18 = vadd.f32 %v296_v1, %v185_v7  ;;  %v189_v19 = vmul.f32 %v295_v0, %v177_v14 }
  0x12   : > { %v198_v20 = vadd.f32 %v296_v1, %v186_v11  ;;  %v199_v21 = vadd.f32 %v296_v1, %v187_v12  ;;  %v200_v22 = vadd.f32 %v296_v1, %v188_v13  ;;  %v190_v23 = vmul.f32 %v295_v0, %v178_v15 }
  0x13   : > { %v203_v24 = vmax.f32 %v195_v16, 0.0  ;;  %v204_v25 = vmax.f32 %v196_v17, 0.0  ;;  %v205_v26 = vmax.f32 %v197_v18, 0.0  ;;  %v201_v27 = vadd.f32 %v296_v1, %v189_v19 }
  0x14   : > { %v206_v28 = vmax.f32 %v198_v20, 0.0  ;;  %v202_v29 = vadd.f32 %v296_v1, %v190_v23  ;;  %v207_v30 = vmax.f32 %v199_v21, 0.0  ;;  %v208_v31 = vmax.f32 %v200_v22, 0.0 }
  0x15   : > { %211 = vst [vmem:[%s170_s24] sm:$0xff] %v203_v24  ;;  %v209_v32 = vmax.f32 %v201_v27, 0.0 }
  0x16   : > { %212 = vst [vmem:[%s170_s24 + $0x8] sm:$0xff] %v204_v25  ;;  %v210_v33 = vmax.f32 %v202_v29, 0.0 }
  0x17   : > { %213 = vst [vmem:[%s170_s24 + $0x10] sm:$0xff] %v205_v26 }
  0x18   : > { %214 = vst [vmem:[%s170_s24 + $0x18] sm:$0xff] %v206_v28 }
  0x19   : > { %215 = vst [vmem:[%s170_s24 + $0x20] sm:$0xff] %v207_v30 }
  0x1a   : > { %216 = vst [vmem:[%s170_s24 + $0x28] sm:$0xff] %v208_v31 }
  0x1b   : > { %217 = vst [vmem:[%s170_s24 + $0x30] sm:$0xff] %v209_v32 }
  0x1c   : > { %218 = vst [vmem:[%s170_s24 + $0x38] sm:$0xff] %v210_v33 }
  0x1d PF: > { %s13_s12 = sadd.s32 1, %s303_s12  }
  0x1e   : > { %p10_p4 = scmp.ge.s32.totalorder %s13_s12, 4  }
  0x20   :  { %12 = sbr.rel (!%p10_p4) target bundleno = 1 (0x1), region = 62 }

// kernel: downsample_forward.4
= control target key start
LH: loop header
LB: loop body
LE: loop exit
PB: predicated region body
PF: predicated region fallthrough
CT: control target
= control target key end

     0   :  { %s1155_s21 = smov 0   ;;  %s1868_s0 = inlined_call_operand.vmem [shape: f32[2,8,8,128], index: 0, kind: input, shape index: {}]   ;;  %s1869_s1 = inlined_call_operand.vmem [shape: f32[1,128], index: 1, kind: input, shape index: {}]   ;;  %s1870_s2 = inlined_call_operand.vmem [shape: f32[1,128], index: 2, kind: input, shape index: {}]   ;;  %s1871_s3 = inlined_call_operand.vmem [shape: f32[1152,128], index: 3, kind: input, shape index: {}]   ;;  %s1872_s4 = inlined_call_operand.vmem [shape: f32[1,128], index: 4, kind: input, shape index: {}]   ;;  %s1873_s5 = inlined_call_operand.vmem [shape: f32[2,8,8,128], index: 5, kind: output, shape index: {0}]   ;;  %s1874_s6 = inlined_call_operand.vmem [shape: f32[2,2,128], index: 6, kind: output, shape index: {1}]  }
   0x1 LB: > { %s1053_s22 = sadd.s32 4294967295, %s1117_s21   ;;  %p1057_p0 = scmp.ge.s32.totalorder %s1117_s21, 1  ;;  %s1117_s21 = sphi %s1155_s21, %s17_s21  }
   0x2   : > { %p215_p1 = scmp.lt.s32.totalorder %s1117_s21, 3 }
   0x4   : > { %p216_p2 = pnand %p1057_p0, %p215_p1 }
   0x5   : > { %p249_p3 = scmp.lt.s32.totalorder (!%p216_p2), %s1053_s22, 1 }
   0x6   : > { %219 = sbr.rel (%p216_p2) target bundleno = 347 (0x15b), region = 40 }
   0xb   : > { %v420_v0 = vld [vmem:[%s1871_s3 + $0x78] sm:$0xff]  ;;  %v419_v1 = vld [vmem:[%s1871_s3 + $0x70] sm:$0xff]  ;;  %v1119_v2 = vmov 0.0   ;;  %v418_v3 = vld [vmem:[%s1871_s3 + $0x68] sm:$0xff]  ;;  %s1876_s22 = smov (!%p249_p3, %s1053_s22), 1  ;;  %vm964_vm0 = vcmask 1040384  }
   0xc   : > { %1067 = vmatpush.msra.mxu1 %v420_v0  ;;  %553 = vmatpush.msra.mxu0 %v420_v0  ;;  %311 = vst [vmem:[#allocation2 + $0x40] sm:$0xff] %v1119_v2  ;;  %v452_v4 = vld [vmem:[%s1871_s3 + $0x178] sm:$0xff]  ;;  %v451_v5 = vld [vmem:[%s1871_s3 + $0x170] sm:$0xff]  ;;  %v417_v6 = vld [vmem:[%s1871_s3 + $0x60] sm:$0xff]  ;;  %s1065_s11 = sshll.u32 %s1876_s22, 6 }
   0xd   : > { %312 = vst [vmem:[#allocation2 + $0x48] sm:$0x3] %v1119_v2  ;;  %635 = vmatpush.msra.mxu2 %v452_v4  ;;  %v450_v7 = vld [vmem:[%s1871_s3 + $0x168] sm:$0xff]  ;;  %s1196_s16 = scalar_lea.vmem %s1868_s0, %s1065_s11  ;;  %v416_v8 = vld [vmem:[%s1871_s3 + $0x58] sm:$0xff]  ;;  %v415_v9 = vld [vmem:[%s1871_s3 + $0x50] sm:$0xff]  ;;  %s1836_s14 = scalar_lea.vmem %s1873_s5, %s1065_s11 }
   0xe   : > { %1068 = vmatpush.msra.mxu1 %v419_v1  ;;  %554 = vmatpush.msra.mxu0 %v419_v1  ;;  %303 = vst [vmem:[#allocation2] sm:$0xff] %v1119_v2  ;;  %v449_v10 = vld [vmem:[%s1871_s3 + $0x160] sm:$0xff]  ;;  %v448_v11 = vld [vmem:[%s1871_s3 + $0x158] sm:$0xff]  ;;  %v414_v16 = vld [vmem:[%s1871_s3 + $0x48] sm:$0xff]  ;;  %s1062_s11 = sshll.u32 %s1876_s22, 1 }
   0xf   : > { %304 = vst [vmem:[#allocation2 + $0x8] sm:$0x3] %v1119_v2  ;;  %636 = vmatpush.msra.mxu2 %v451_v5  ;;  %v468_v12 = vld [vmem:[%s1871_s3 + $0x1f8] sm:$0xff]  ;;  %v1221_v14 = vld [vmem:[%s1869_s1] ss:$0 sm:$0xff]  ;;  %v467_v17 = vld [vmem:[%s1871_s3 + $0x1f0] sm:$0xff]  ;;  %s262_s18 = scalar_lea.vmem %s1874_s6, %s1062_s11 }
  0x10   : > { %1069 = vmatpush.msra.mxu1 %v418_v3  ;;  %555 = vmatpush.msra.mxu0 %v418_v3  ;;  %305 = vst [vmem:[#allocation2 + $0x10] sm:$0xff] %v1119_v2  ;;  %v266_v13 = vld [vmem:[%s1196_s16 + $0x18] sm:$0xff]  ;;  %v1226_v15 = vld [vmem:[%s1870_s2] ss:$0 sm:$0xff]  ;;  %v447_v18 = vld [vmem:[%s1871_s3 + $0x150] sm:$0xff] }
  0x11   : > { %306 = vst [vmem:[#allocation2 + $0x18] sm:$0x3] %v1119_v2  ;;  %637 = vmatpush.msra.mxu2 %v450_v7  ;;  %676 = vmatpush.msra.mxu3 %v468_v12  ;;  %v278_v19 = vmul.f32 %v1221_v14, %v266_v13  ;;  %v466_v20 = vld [vmem:[%s1871_s3 + $0x1e8] sm:$0xff]  ;;  %v413_v21 = vld [vmem:[%s1871_s3 + $0x40] sm:$0xff]  ;;  %v412_v25 = vld [vmem:[%s1871_s3 + $0x38] sm:$0xff] }
  0x12   : > { %1070 = vmatpush.msra.mxu1 %v417_v6  ;;  %556 = vmatpush.msra.mxu0 %v417_v6  ;;  %307 = vst [vmem:[#allocation2 + $0x20] sm:$0xff] %v1119_v2  ;;  %v446_v22 = vld [vmem:[%s1871_s3 + $0x148] sm:$0xff]  ;;  %v465_v24 = vld [vmem:[%s1871_s3 + $0x1e0] sm:$0xff]  ;;  %v464_v29 = vld [vmem:[%s1871_s3 + $0x1d8] sm:$0xff] }
  0x13   : > { %308 = vst [vmem:[#allocation2 + $0x28] sm:$0x3] %v1119_v2  ;;  %638 = vmatpush.msra.mxu2 %v449_v10  ;;  %677 = vmatpush.msra.mxu3 %v467_v17  ;;  %v290_v23 = vadd.f32 %v1226_v15, %v278_v19  ;;  %v267_v26 = vld [vmem:[%s1196_s16 + $0x20] sm:$0xff]  ;;  %v411_v31 = vld [vmem:[%s1871_s3 + $0x30] sm:$0xff]  ;;  %v444_v32 = vld [vmem:[%s1871_s3 + $0x138] sm:$0xff] }
  0x14   : > { %1071 = vmatpush.msra.mxu1 %v416_v8  ;;  %557 = vmatpush.msra.mxu0 %v416_v8  ;;  %309 = vst [vmem:[#allocation2 + $0x30] sm:$0xff] %v1119_v2  ;;  %v445_v27 = vld [vmem:[%s1871_s3 + $0x140] sm:$0xff]  ;;  %v279_v30 = vmul.f32 %v1221_v14, %v267_v26  ;;  %v463_v34 = vld [vmem:[%s1871_s3 + $0x1d0] sm:$0xff]  ;;  %v410_v35 = vld [vmem:[%s1871_s3 + $0x28] sm:$0xff] }
  0x15   : > { %310 = vst [vmem:[#allocation2 + $0x38] sm:$0x3] %v1119_v2  ;;  %639 = vmatpush.msra.mxu2 %v448_v11  ;;  %678 = vmatpush.msra.mxu3 %v466_v20  ;;  %v1263_v28 = vmax.f32 %v290_v23, 0.0  ;;  %v263_v36 = vld [vmem:[%s1196_s16] sm:$0xff]  ;;  %v443_v37 = vld [vmem:[%s1871_s3 + $0x130] sm:$0xff]  ;;  %v462_v39 = vld [vmem:[%s1871_s3 + $0x1c8] sm:$0xff] }
  0x16   : > { %1072 = vmatpush.msra.mxu1 %v415_v9  ;;  %558 = vmatpush.msra.mxu0 %v415_v9  ;;  %313 = vst [vmem:[#allocation2 + $0x50] sm:$0xff] %v1119_v2  ;;  %v291_v33 = vadd.f32 %v1226_v15, %v279_v30  ;;  %v275_v40 = vmul.f32 %v1221_v14, %v263_v36  ;;  %v409_v41 = vld [vmem:[%s1871_s3 + $0x20] sm:$0xff]  ;;  %v268_v42 = vld [vmem:[%s1196_s16 + $0x28] sm:$0xff]  ;;  %v408_v47 = vld [vmem:[%s1871_s3 + $0x18] sm:$0xff] }
  0x17   : > { %314 = vst [vmem:[#allocation2 + $0x58] sm:$0x3] %v1119_v2  ;;  %640 = vmatpush.msra.mxu2 %v447_v18  ;;  %679 = vmatpush.msra.mxu3 %v465_v24  ;;  %v442_v43 = vld [vmem:[%s1871_s3 + $0x128] sm:$0xff]  ;;  %v461_v44 = vld [vmem:[%s1871_s3 + $0x1c0] sm:$0xff]  ;;  %v280_v46 = vmul.f32 %v1221_v14, %v268_v42  ;;  %v460_v50 = vld [vmem:[%s1871_s3 + $0x1b8] sm:$0xff] }
  0x18   : > { %1073 = vmatpush.msra.mxu1 %v414_v16  ;;  %559 = vmatpush.msra.mxu0 %v414_v16  ;;  %315 = vst [vmem:[#allocation2 + $0x60] sm:$0xff] %v1119_v2  ;;  %v1291_v38 = vmax.f32 %v291_v33, 0.0  ;;  %v287_v45 = vadd.f32 %v1226_v15, %v275_v40  ;;  %v441_v48 = vld [vmem:[%s1871_s3 + $0x120] sm:$0xff]  ;;  %v407_v52 = vld [vmem:[%s1871_s3 + $0x10] sm:$0xff]  ;;  %v440_v53 = vld [vmem:[%s1871_s3 + $0x118] sm:$0xff] }
  0x19   : > { %316 = vst [vmem:[#allocation2 + $0x68] sm:$0x3] %v1119_v2  ;;  %641 = vmatpush.msra.mxu2 %v446_v22  ;;  %680 = vmatpush.msra.mxu3 %v464_v29  ;;  %v292_v51 = vadd.f32 %v1226_v15, %v280_v46  ;;  %v459_v55 = vld [vmem:[%s1871_s3 + $0x1b0] sm:$0xff]  ;;  %v264_v56 = vld [vmem:[%s1196_s16 + $0x8] sm:$0xff]  ;;  %v405_v63 = vld [vmem:[%s1871_s3] sm:$0xff] }
  0x1a   : > { %1074 = vmatpush.msra.mxu1 %v413_v21  ;;  %560 = vmatpush.msra.mxu0 %v413_v21  ;;  %317 = vst [vmem:[#allocation2 + $0x70] sm:$0xff] %v1119_v2  ;;  %v1319_v49 = vmax.f32 %v287_v45, 0.0  ;;  %v406_v57 = vld [vmem:[%s1871_s3 + $0x8] sm:$0xff]  ;;  %v276_v58 = vmul.f32 %v1221_v14, %v264_v56  ;;  %v269_v59 = vld [vmem:[%s1196_s16 + $0x30] sm:$0xff]  ;;  %v436_v4 = vld [vmem:[%s1871_s3 + $0xf8] sm:$0xff] }
  0x1b   : > { %327 = vst [vmem:[#allocation2 + $0x41] sm:$0xff] %v1263_v28  ;;  %642 = vmatpush.msra.mxu2 %v445_v27  ;;  %681 = vmatpush.msra.mxu3 %v463_v34  ;;  %v1332_v54 = vmax.f32 %v292_v51, 0.0  ;;  %v439_v60 = vld [vmem:[%s1871_s3 + $0x110] sm:$0xff]  ;;  %v458_v61 = vld [vmem:[%s1871_s3 + $0x1a8] sm:$0xff]  ;;  %v281_v62 = vmul.f32 %v1221_v14, %v269_v59  ;;  %v484_v5 = vld [vmem:[%s1871_s3 + $0x278] sm:$0xff] }
  0x1c   : > { %1075 = vmatpush.msra.mxu1 %v412_v25  ;;  %561 = vmatpush.msra.mxu0 %v412_v25  ;;  %318 = vst [vmem:[#allocation2 + $0x78] sm:$0x3] %v1119_v2  ;;  %v288_v0 = vadd.f32 %v1226_v15, %v276_v58  ;;  %v265_v7 = vld [vmem:[%s1196_s16 + $0x10] sm:$0xff]  ;;  %v438_v8 = vld [vmem:[%s1871_s3 + $0x108] sm:$0xff]  ;;  %v457_v9 = vld [vmem:[%s1871_s3 + $0x1a0] sm:$0xff] }
  0x1d   : > { %319 = vst [vmem:[#allocation2 + $0x80] sm:$0xff] %v1119_v2  ;;  %643 = vmatpush.msra.mxu2 %v444_v32  ;;  %682 = vmatpush.msra.mxu3 %v462_v39  ;;  %v293_v3 = vadd.f32 %v1226_v15, %v281_v62  ;;  %v277_v11 = vmul.f32 %v1221_v14, %v265_v7  ;;  %v435_v12 = vld [vmem:[%s1871_s3 + $0xf0] sm:$0xff]  ;;  %v437_v16 = vld [vmem:[%s1871_s3 + $0x100] sm:$0xff]  ;;  %v456_v17 = vld [vmem:[%s1871_s3 + $0x198] sm:$0xff] }
  0x1e   : > { %1076 = vmatpush.msra.mxu1 %v411_v31  ;;  %562 = vmatpush.msra.mxu0 %v411_v31  ;;  %320 = vst [vmem:[#allocation2 + $0x88] sm:$0x3] %v1119_v2  ;;  %v1364_v6 = vmax.f32 %v288_v0, 0.0  ;;  %v483_v13 = vld [vmem:[%s1871_s3 + $0x270] sm:$0xff]  ;;  %v434_v19 = vld [vmem:[%s1871_s3 + $0xe8] sm:$0xff]  ;;  %v433_v24 = vld [vmem:[%s1871_s3 + $0xe0] sm:$0xff] }
  0x1f   : > { %321 = vst [vmem:[#allocation2 + $0x90] sm:$0xff] %v1119_v2  ;;  %644 = vmatpush.msra.mxu2 %v443_v37  ;;  %683 = vmatpush.msra.mxu3 %v461_v44  ;;  %v1373_v10 = vmax.f32 %v293_v3, 0.0  ;;  %v289_v18 = vadd.f32 %v1226_v15, %v277_v11  ;;  %v482_v20 = vld [vmem:[%s1871_s3 + $0x268] sm:$0xff]  ;;  %v455_v22 = vld [vmem:[%s1871_s3 + $0x190] sm:$0xff]  ;;  %v481_v25 = vld [vmem:[%s1871_s3 + $0x260] sm:$0xff] }
  0x20   : > { %1077 = vmatpush.msra.mxu1 %v410_v35  ;;  %563 = vmatpush.msra.mxu0 %v410_v35  ;;  %322 = vst [vmem:[#allocation2 + $0x98] sm:$0x3] %v1119_v2  ;;  %v348_v21 = vld [vmem:[#allocation2 + $0x2] sm:$0xff]  ;;  %v432_v29 = vld [vmem:[%s1871_s3 + $0xd8] sm:$0xff]  ;;  %v431_v33 = vld [vmem:[%s1871_s3 + $0xd0] sm:$0xff] }
  0x21   : > { %328 = vst [vmem:[#allocation2 + $0x51] sm:$0xff] %v1291_v38  ;;  %645 = vmatpush.msra.mxu2 %v442_v43  ;;  %684 = vmatpush.msra.mxu3 %v460_v50  ;;  %v1402_v23 = vmax.f32 %v289_v18, 0.0  ;;  %v480_v30 = vld [vmem:[%s1871_s3 + $0x258] sm:$0xff]  ;;  %v454_v32 = vld [vmem:[%s1871_s3 + $0x188] sm:$0xff]  ;;  %v479_v34 = vld [vmem:[%s1871_s3 + $0x250] sm:$0xff] }
  0x22   : > { %1078 = vmatpush.msra.mxu1 %v409_v41  ;;  %564 = vmatpush.msra.mxu0 %v409_v41  ;;  %324 = vst [vmem:[#allocation2 + $0x11] sm:$0xff] %v1319_v49  ;;  %v1355_v1 = vld [vmem:[#allocation2 + $0x40] sm:$0xff]  ;;  %v516_v31 = vld [vmem:[%s1871_s3 + $0x378] sm:$0xff]  ;;  %v515_v35 = vld [vmem:[%s1871_s3 + $0x370] sm:$0xff] }
  0x23   : > { %646 = vmatpush.msra.mxu2 %v441_v48  ;;  %329 = vst [vmem:[#allocation2 + $0x61] sm:$0xff] %v1332_v54  ;;  %685 = vmatpush.msra.mxu3 %v459_v55  ;;  %v453_v36 = vld [vmem:[%s1871_s3 + $0x180] sm:$0xff]  ;;  %v430_v37 = vld [vmem:[%s1871_s3 + $0xc8] sm:$0xff]  ;;  %v428_v45 = vld [vmem:[%s1871_s3 + $0xb8] sm:$0xff] }
  0x24   : > { %1079 = vmatpush.msra.mxu1 %v408_v47  ;;  %565 = vmatpush.msra.mxu0 %v408_v47  ;;  %325 = vst [vmem:[#allocation2 + $0x21] sm:$0xff] %v1364_v6  ;;  %v478_v39 = vld [vmem:[%s1871_s3 + $0x248] sm:$0xff]  ;;  %v429_v41 = vld [vmem:[%s1871_s3 + $0xc0] sm:$0xff]  ;;  %v476_v46 = vld [vmem:[%s1871_s3 + $0x238] sm:$0xff] }
  0x25   : > { %647 = vmatpush.msra.mxu2 %v440_v53  ;;  %686 = vmatpush.msra.mxu3 %v458_v61  ;;  %330 = vst [vmem:[#allocation2 + $0x71] sm:$0xff] %v1373_v10  ;;  %v477_v42 = vld [vmem:[%s1871_s3 + $0x240] sm:$0xff]  ;;  %v514_v47 = vld [vmem:[%s1871_s3 + $0x368] sm:$0xff]  ;;  %v532_v48 = vld [vmem:[%s1871_s3 + $0x3f8] sm:$0xff] }
  0x26   : > { %1080 = vmatpush.msra.mxu1 %v407_v52  ;;  %566 = vmatpush.msra.mxu0 %v407_v52  ;;  %326 = vst [vmem:[#allocation2 + $0x31] sm:$0xff] %v1402_v23  ;;  %v427_v50 = vld [vmem:[%s1871_s3 + $0xb0] sm:$0xff]  ;;  %v513_v52 = vld [vmem:[%s1871_s3 + $0x360] sm:$0xff]  ;;  %v426_v55 = vld [vmem:[%s1871_s3 + $0xa8] sm:$0xff] }
  0x27   : > { %648 = vmatpush.msra.mxu2 %v439_v60  ;;  %687 = vmatpush.msra.mxu3 %v457_v9  ;;  %v475_v51 = vld [vmem:[%s1871_s3 + $0x230] sm:$0xff]  ;;  %v474_v56 = vld [vmem:[%s1871_s3 + $0x228] sm:$0xff]  ;;  %v425_v58 = vld [vmem:[%s1871_s3 + $0xa0] sm:$0xff] }
  0x28   : > { %1081 = vmatpush.msra.mxu1 %v406_v57  ;;  %567 = vmatpush.msra.mxu0 %v406_v57  ;;  %v1410_v26 = vld [vmem:[#allocation2 + $0x50] sm:$0xff]  ;;  %v473_v59 = vld [vmem:[%s1871_s3 + $0x220] sm:$0xff]  ;;  %v424_v62 = vld [vmem:[%s1871_s3 + $0x98] sm:$0xff] }
  0x29   : > { %649 = vmatpush.msra.mxu2 %v438_v8  ;;  %688 = vmatpush.msra.mxu3 %v456_v17  ;;  %v333_v27 = vld [vmem:[#allocation2 + $0x10] sm:$0xff]  ;;  %v512_v0 = vld [vmem:[%s1871_s3 + $0x358] sm:$0xff]  ;;  %v530_v3 = vld [vmem:[%s1871_s3 + $0x3e8] sm:$0xff] }
  0x2a   : > { %1082 = vmatpush.msra.mxu1 %v405_v63  ;;  %568 = vmatpush.msra.mxu0 %v405_v63  ;;  %v1444_v40 = vld [vmem:[#allocation2 + $0x12] sm:$0xff]  ;;  %v1452_v43 = vld [vmem:[#allocation2 + $0x60] sm:$0xff]  ;;  %v422_v9 = vld [vmem:[%s1871_s3 + $0x88] sm:$0xff] }
  0x2b   : > { %581 = vmatmul.f32.vlgmr.msra.gmra.mxu1 %v1355_v1  ;;  %569 = vmatmul.f32.vlgmr.msra.gmra.mxu0 %v1119_v2  ;;  %v1454_v44 = vld [vmem:[#allocation2 + $0x20] sm:$0xff]  ;;  %v531_v53 = vld [vmem:[%s1871_s3 + $0x3f0] sm:$0xff]  ;;  %v472_v63 = vld [vmem:[%s1871_s3 + $0x218] sm:$0xff] }
  0x2c   : > { %594 = vmatpush.msrb.mxu1 %v436_v4  ;;  %717 = vmatpush.msrb.mxu0 %v484_v5  ;;  %v1489_v57 = vld [vmem:[#allocation2 + $0x22] sm:$0xff]  ;;  %v1497_v60 = vld [vmem:[#allocation2 + $0x70] sm:$0xff]  ;;  %v500_v18 = vld [vmem:[%s1871_s3 + $0x2f8] sm:$0xff] }
  0x2d   : > { %650 = vmatpush.msra.mxu2 %v437_v16  ;;  %689 = vmatpush.msra.mxu3 %v455_v22  ;;  %v1499_v61 = vld [vmem:[#allocation2 + $0x30] sm:$0xff]  ;;  %v529_v8 = vld [vmem:[%s1871_s3 + $0x3e0] sm:$0xff]  ;;  %v470_v11 = vld [vmem:[%s1871_s3 + $0x208] sm:$0xff] }
  0x2e   : > { %595 = vmatpush.msrb.mxu1 %v435_v12  ;;  %718 = vmatpush.msrb.mxu0 %v483_v13  ;;  %v423_v4 = vld [vmem:[%s1871_s3 + $0x90] sm:$0xff]  ;;  %v421_v13 = vld [vmem:[%s1871_s3 + $0x80] sm:$0xff] }
  0x2f   : > { %651 = vmatmul.f32.vlgmr.msra.gmra.mxu2 %v348_v21  ;;  %690 = vmatpush.msra.mxu3 %v454_v32  ;;  %v471_v5 = vld [vmem:[%s1871_s3 + $0x210] sm:$0xff]  ;;  %v469_v16 = vld [vmem:[%s1871_s3 + $0x200] sm:$0xff]  ;;  %v1557_v21 = vld [vmem:[%s1871_s3 + $0x478] sm:$0xff] }
  0x30   : > { %596 = vmatpush.msrb.mxu1 %v434_v19  ;;  %719 = vmatpush.msrb.mxu0 %v482_v20  ;;  %v511_v7 = vld [vmem:[%s1871_s3 + $0x350] sm:$0xff]  ;;  %v340_v17 = vld [vmem:[#allocation2 + $0x1] sm:$0xff]  ;;  %v528_v20 = vld [vmem:[%s1871_s3 + $0x3d8] sm:$0xff] }
  0x31   : > { %799 = vmatpush.msrb.mxu2 %v516_v31  ;;  %691 = vmatpush.msra.mxu3 %v453_v36  ;;  %v1535_v12 = vld [vmem:[#allocation2 + $0x32] sm:$0xff]  ;;  %v510_v19 = vld [vmem:[%s1871_s3 + $0x348] sm:$0xff]  ;;  %v497_v32 = vld [vmem:[%s1871_s3 + $0x2e0] sm:$0xff] }
  0x32   : > { %597 = vmatpush.msrb.mxu1 %v433_v24  ;;  %720 = vmatpush.msrb.mxu0 %v481_v25  ;;  %v499_v22 = vld [vmem:[%s1871_s3 + $0x2f0] sm:$0xff]  ;;  %v509_v24 = vld [vmem:[%s1871_s3 + $0x340] sm:$0xff]  ;;  %v506_v36 = vld [vmem:[%s1871_s3 + $0x328] sm:$0xff] }
  0x33   : > { %584 = vmatmul.f32.gmra.mxu1 %v1410_v26  ;;  %572 = vmatmul.f32.gmra.mxu0 %v333_v27  ;;  %v527_v25 = vld [vmem:[%s1871_s3 + $0x3d0] sm:$0xff]  ;;  %v1581_v31 = vld [vmem:[#allocation2 + $0x42] sm:$0xff] }
  0x34   : > { %598 = vmatpush.msrb.mxu1 %v432_v29  ;;  %721 = vmatpush.msrb.mxu0 %v480_v30  ;;  %v498_v29 = vld [vmem:[%s1871_s3 + $0x2e8] sm:$0xff]  ;;  %v508_v30 = vld [vmem:[%s1871_s3 + $0x338] sm:$0xff] }
  0x35   : > { %800 = vmatpush.msrb.mxu2 %v515_v35  ;;  %692 = vmatmul.f32.vlgmr.msra.gmra.mxu3 %v333_v27  ;;  %v1572_v27 = vld [vmem:[%s1871_s3 + $0x470] sm:$0xff]  ;;  %v526_v35 = vld [vmem:[%s1871_s3 + $0x3c8] sm:$0xff] }
  0x36   : > { %599 = vmatpush.msrb.mxu1 %v431_v33  ;;  %722 = vmatpush.msrb.mxu0 %v479_v34  ;;  %v507_v33 = vld [vmem:[%s1871_s3 + $0x330] sm:$0xff]  ;;  %v496_v34 = vld [vmem:[%s1871_s3 + $0x2d8] sm:$0xff] }
  0x37   : > { %654 = vmatmul.f32.gmra.mxu2 %v1444_v40  ;;  %840 = vmatpush.msrb.mxu3 %v532_v48 }
  0x38   : > { %600 = vmatpush.msrb.mxu1 %v430_v37  ;;  %723 = vmatpush.msrb.mxu0 %v478_v39  ;;  %v1604_v37 = vld [vmem:[%s1871_s3 + $0x468] sm:$0xff]  ;;  %v270_v39 = vld [vmem:[%s1196_s16 + $0x38] sm:$0xff] }
  0x39   : > { %801 = vmatpush.msrb.mxu2 %v514_v47  ;;  %841 = vmatpush.msrb.mxu3 %v531_v53  ;;  %v494_v47 = vld [vmem:[%s1871_s3 + $0x2c8] sm:$0xff] }
  0x3a   : > { %601 = vmatpush.msrb.mxu1 %v429_v41  ;;  %724 = vmatpush.msrb.mxu0 %v477_v42  ;;  %v495_v41 = vld [vmem:[%s1871_s3 + $0x2d0] sm:$0xff]  ;;  %v525_v42 = vld [vmem:[%s1871_s3 + $0x3c0] sm:$0xff] }
  0x3b   : > { %587 = vmatmul.f32.gmra.mxu1 %v1452_v43  ;;  %575 = vmatmul.f32.gmra.mxu0 %v1454_v44 }
  0x3c   : > { %602 = vmatpush.msrb.mxu1 %v428_v45  ;;  %725 = vmatpush.msrb.mxu0 %v476_v46  ;;  %v282_v45 = vmul.f32 %v1221_v14, %v270_v39  ;;  %v505_v46 = vld [vmem:[%s1871_s3 + $0x320] sm:$0xff]  ;;  %v524_v14 = vld [vmem:[%s1871_s3 + $0x3b8] sm:$0xff] }
  0x3d   : > { %802 = vmatpush.msrb.mxu2 %v513_v52  ;;  %695 = vmatmul.f32.gmra.mxu3 %v1454_v44  ;;  %v504_v52 = vld [vmem:[%s1871_s3 + $0x318] sm:$0xff] }
  0x3e   : > { %603 = vmatpush.msrb.mxu1 %v427_v50  ;;  %726 = vmatpush.msrb.mxu0 %v475_v51  ;;  %v294_v48 = vadd.f32 %v1226_v15, %v282_v45  ;;  %v1632_v50 = vld [vmem:[#allocation2 + $0x52] sm:$0xff]  ;;  %v493_v51 = vld [vmem:[%s1871_s3 + $0x2c0] sm:$0xff] }
  0x3f   : > { %657 = vmatmul.f32.gmra.mxu2 %v1489_v57  ;;  %842 = vmatpush.msrb.mxu3 %v530_v3  ;;  %v492_v15 = vld [vmem:[%s1871_s3 + $0x2b8] sm:$0xff]  ;;  %v490_v3 = vld [vmem:[%s1871_s3 + $0x2a8] sm:$0xff] }
  0x40   : > { %604 = vmatpush.msrb.mxu1 %v426_v55  ;;  %727 = vmatpush.msrb.mxu0 %v474_v56  ;;  %v1641_v53 = vmax.f32 %v294_v48, 0.0  ;;  %v523_v55 = vld [vmem:[%s1871_s3 + $0x3b0] sm:$0xff]  ;;  %v1655_v56 = vld [vmem:[%s1871_s3 + $0x458] sm:$0xff] }
  0x41   : > { %803 = vmatpush.msrb.mxu2 %v512_v0  ;;  %843 = vmatpush.msrb.mxu3 %v529_v8  ;;  %v502_v0 = vld [vmem:[%s1871_s3 + $0x308] sm:$0xff]  ;;  %v489_v8 = vld [vmem:[%s1871_s3 + $0x2a0] sm:$0xff] }
  0x42   : > { %605 = vmatpush.msrb.mxu1 %v425_v58  ;;  %728 = vmatpush.msrb.mxu0 %v473_v59  ;;  %331 = vst [vmem:[#allocation2 + $0x81] sm:$0xff] %v1641_v53  ;;  %v503_v58 = vld [vmem:[%s1871_s3 + $0x310] sm:$0xff] }
  0x43   : > { %590 = vmatmul.f32.gmra.mxu1 %v1497_v60  ;;  %578 = vmatmul.f32.gmra.mxu0 %v1499_v61  ;;  %v491_v59 = vld [vmem:[%s1871_s3 + $0x2b0] sm:$0xff] }
  0x44   : > { %606 = vmatpush.msrb.mxu1 %v424_v62  ;;  %729 = vmatpush.msrb.mxu0 %v472_v63  ;;  %v522_v62 = vld [vmem:[%s1871_s3 + $0x3a8] sm:$0xff]  ;;  %v1671_v63 = vld [vmem:[%s1871_s3 + $0x450] sm:$0xff] }
  0x45   : > { %804 = vmatpush.msrb.mxu2 %v511_v7  ;;  %698 = vmatmul.f32.gmra.mxu3 %v1499_v61  ;;  %v542_v7 = vld [vmem:[%s1871_s3 + $0x448] sm:$0xff] }
  0x46   : > { %607 = vmatpush.msrb.mxu1 %v423_v4  ;;  %730 = vmatpush.msrb.mxu0 %v471_v5  ;;  %v521_v4 = vld [vmem:[%s1871_s3 + $0x3a0] sm:$0xff] }
  0x47   : > { %660 = vmatmul.f32.gmra.mxu2 %v1535_v12  ;;  %844 = vmatpush.msrb.mxu3 %v528_v20  ;;  %v1683_v5 = vld [vmem:[#allocation2 + $0x62] sm:$0xff] }
  0x48   : > { %608 = vmatpush.msrb.mxu1 %v422_v9  ;;  %731 = vmatpush.msrb.mxu0 %v470_v11  ;;  %v501_v9 = vld [vmem:[%s1871_s3 + $0x300] sm:$0xff]  ;;  %v520_v11 = vld [vmem:[%s1871_s3 + $0x398] sm:$0xff]  ;;  %v518_v20 = vld [vmem:[%s1871_s3 + $0x388] sm:$0xff] }
  0x49   : > { %805 = vmatpush.msrb.mxu2 %v510_v19  ;;  %845 = vmatpush.msrb.mxu3 %v527_v25  ;;  %v487_v19 = vld [vmem:[%s1871_s3 + $0x290] sm:$0xff]  ;;  %v486_v25 = vld [vmem:[%s1871_s3 + $0x288] sm:$0xff] }
  0x4a   : > { %609 = vmatpush.msrb.mxu1 %v421_v13  ;;  %732 = vmatpush.msrb.mxu0 %v469_v16  ;;  %v541_v13 = vld [vmem:[%s1871_s3 + $0x440] sm:$0xff]  ;;  %v488_v16 = vld [vmem:[%s1871_s3 + $0x298] sm:$0xff] }
  0x4b   : > { %610 = vmatmul.f32.vlgmr.msrb.gmra.mxu1 %v340_v17  ;;  %733 = vmatmul.f32.vlgmr.msrb.gmra.mxu0 %v1319_v49  ;;  %v519_v17 = vld [vmem:[%s1871_s3 + $0x390] sm:$0xff] }
  0x4c   : > { %758 = vmatpush.msra.mxu1 %v500_v18  ;;  %881 = vmatpush.msra.mxu0 %v1557_v21  ;;  %v540_v18 = vld [vmem:[%s1871_s3 + $0x438] sm:$0xff] }
  0x4d   : > { %806 = vmatpush.msrb.mxu2 %v509_v24  ;;  %701 = vmatmul.f32.gmra.mxu3 %v1355_v1  ;;  %v539_v24 = vld [vmem:[%s1871_s3 + $0x430] sm:$0xff] }
  0x4e   : > { %759 = vmatpush.msra.mxu1 %v499_v22  ;;  %882 = vmatpush.msra.mxu0 %v1572_v27  ;;  %v1720_v22 = vld [vmem:[#allocation2 + $0x72] sm:$0xff] }
  0x4f   : > { %807 = vmatpush.msrb.mxu2 %v508_v30  ;;  %846 = vmatpush.msrb.mxu3 %v526_v35  ;;  %v485_v30 = vld [vmem:[%s1871_s3 + $0x280] sm:$0xff]  ;;  %v534_v35 = vld [vmem:[%s1871_s3 + $0x408] sm:$0xff] }
  0x50   : > { %760 = vmatpush.msra.mxu1 %v498_v29  ;;  %663 = vmatmul.f32.gmra.mxu2 %v1581_v31  ;;  %v538_v29 = vld [vmem:[%s1871_s3 + $0x428] sm:$0xff] }
  0x51   : > { %808 = vmatpush.msrb.mxu2 %v507_v33  ;;  %883 = vmatpush.msra.mxu0 %v1604_v37  ;;  %v536_v33 = vld [vmem:[%s1871_s3 + $0x418] sm:$0xff] }
  0x52   : > { %761 = vmatpush.msra.mxu1 %v497_v32  ;;  %847 = vmatpush.msrb.mxu3 %v525_v42  ;;  %v363_v32 = vld [vmem:[#allocation2 + $0x80] sm:$0xff] }
  0x53   : > { %613 = vmatmul.f32.gmra.mxu1 %v1319_v49  ;;  %736 = vmatmul.f32.gmra.mxu0 %v1364_v6  ;;  %v1622_v49 = vld [vmem:[%s1871_s3 + $0x460] sm:$0xff] }
  0x54   : > { %762 = vmatpush.msra.mxu1 %v496_v34  ;;  %809 = vmatpush.msrb.mxu2 %v506_v36  ;;  %v535_v34 = vld [vmem:[%s1871_s3 + $0x410] sm:$0xff]  ;;  %v1110_v36 = vld [vmem:[%s1872_s4] ss:$0 sm:$0xff] }
  0x55   : > { %884 = vmatpush.msra.mxu0 %v1622_v49  ;;  %848 = vmatpush.msrb.mxu3 %v524_v14 }
  0x56   : > { %763 = vmatpush.msra.mxu1 %v495_v41  ;;  %810 = vmatpush.msrb.mxu2 %v505_v46 }
  0x57   : > { %704 = vmatmul.f32.gmra.mxu3 %v1410_v26  ;;  %885 = vmatpush.msra.mxu0 %v1655_v56 }
  0x58   : > { %764 = vmatpush.msra.mxu1 %v494_v47  ;;  %666 = vmatmul.f32.gmra.mxu2 %v1632_v50 }
  0x59   : > { %811 = vmatpush.msrb.mxu2 %v504_v52  ;;  %849 = vmatpush.msrb.mxu3 %v523_v55 }
  0x5a   : > { %765 = vmatpush.msra.mxu1 %v493_v51  ;;  %886 = vmatpush.msra.mxu0 %v1671_v63 }
  0x5b   : > { %616 = vmatmul.f32.gmra.mxu1 %v1364_v6  ;;  %739 = vmatmul.f32.gmra.mxu0 %v1402_v23 }
  0x5c   : > { %766 = vmatpush.msra.mxu1 %v492_v15  ;;  %812 = vmatpush.msrb.mxu2 %v503_v58 }
  0x5d   : > { %850 = vmatpush.msrb.mxu3 %v522_v62  ;;  %887 = vmatpush.msra.mxu0 %v542_v7 }
  0x5e   : > { %767 = vmatpush.msra.mxu1 %v491_v59  ;;  %813 = vmatpush.msrb.mxu2 %v502_v0 }
  0x5f   : > { %851 = vmatpush.msrb.mxu3 %v521_v4  ;;  %888 = vmatpush.msra.mxu0 %v541_v13 }
  0x60   : > { %768 = vmatpush.msra.mxu1 %v490_v3  ;;  %669 = vmatmul.f32.gmra.mxu2 %v1683_v5 }
  0x61   : > { %707 = vmatmul.f32.gmra.mxu3 %v1452_v43  ;;  %814 = vmatpush.msrb.mxu2 %v501_v9 }
  0x62   : > { %769 = vmatpush.msra.mxu1 %v489_v8  ;;  %852 = vmatpush.msrb.mxu3 %v520_v11 }
  0x63   : > { %619 = vmatmul.f32.gmra.mxu1 %v1402_v23  ;;  %742 = vmatmul.f32.gmra.mxu0 %v1263_v28 }
  0x64   : > { %770 = vmatpush.msra.mxu1 %v488_v16  ;;  %1083 = vmatpush.msra.mxu2 %v1557_v21  ;;  %v517_v21 = vld [vmem:[%s1871_s3 + $0x380] sm:$0xff] }
  0x65   : > { %853 = vmatpush.msrb.mxu3 %v519_v17  ;;  %889 = vmatpush.msra.mxu0 %v540_v18 }
  0x66   : > { %771 = vmatpush.msra.mxu1 %v487_v19  ;;  %1084 = vmatpush.msra.mxu2 %v1572_v27  ;;  %v537_v27 = vld [vmem:[%s1871_s3 + $0x420] sm:$0xff] }
  0x67   : > { %854 = vmatpush.msrb.mxu3 %v518_v20  ;;  %890 = vmatpush.msra.mxu0 %v539_v24 }
  0x68   : > { %672 = vmatmul.f32.gmra.mxu2 %v1720_v22  ;;  %772 = vmatpush.msra.mxu1 %v486_v25 }
  0x69   : > { %710 = vmatmul.f32.gmra.mxu3 %v1497_v60  ;;  %1085 = vmatpush.msra.mxu2 %v1604_v37 }
  0x6a   : > { %855 = vmatpush.msrb.mxu3 %v517_v21  ;;  %891 = vmatpush.msra.mxu0 %v538_v29 }
  0x6b   : > { %622 = vmatmul.f32.gmra.mxu1 %v1263_v28  ;;  %745 = vmatmul.f32.gmra.mxu0 %v1291_v38 }
  0x6c   : > { %773 = vmatpush.msra.mxu1 %v485_v30  ;;  %1086 = vmatpush.msra.mxu2 %v1622_v49 }
  0x6d   : > { %892 = vmatpush.msra.mxu0 %v537_v27 }
  0x6e   : > { %1087 = vmatpush.msra.mxu2 %v1655_v56 }
  0x6f   : > { %893 = vmatpush.msra.mxu0 %v536_v33 }
  0x70   : > { %815 = vmatmul.f32.vlgmr.msrb.gmra.mxu2 %v1454_v44  ;;  %v533_v44 = vld [vmem:[%s1871_s3 + $0x400] sm:$0xff] }
  0x71   : > { %713 = vmatmul.f32.gmra.mxu3 %v363_v32  ;;  %1088 = vmatpush.msra.mxu2 %v1671_v63 }
  0x72   : > { %894 = vmatpush.msra.mxu0 %v535_v34 }
  0x73   : > { %625 = vmatmul.f32.gmra.mxu1 %v1291_v38  ;;  %748 = vmatmul.f32.gmra.mxu0 %v1332_v54 }
  0x74   : > { %1089 = vmatpush.msra.mxu2 %v542_v7  ;;  %895 = vmatpush.msra.mxu0 %v534_v35 }
  0x76   : > { %1090 = vmatpush.msra.mxu2 %v541_v13  ;;  %896 = vmatpush.msra.mxu0 %v533_v44 }
  0x78   : > { %1091 = vmatpush.msra.mxu2 %v540_v18 }
  0x79   : > { %818 = vmatmul.f32.gmra.mxu2 %v1499_v61  ;;  %856 = vmatmul.f32.vlgmr.msrb.gmra.mxu3 %v1364_v6 }
  0x7a   : > { %1092 = vmatpush.msra.mxu2 %v539_v24 }
  0x7b   : > { %628 = vmatmul.f32.gmra.mxu1 %v1332_v54  ;;  %751 = vmatmul.f32.gmra.mxu0 %v1373_v10 }
  0x7c   : > { %1093 = vmatpush.msra.mxu2 %v538_v29 }
  0x7e   : > { %1094 = vmatpush.msra.mxu2 %v537_v27 }
  0x80   : > { %1095 = vmatpush.msra.mxu2 %v536_v33 }
  0x81   : > { %821 = vmatmul.f32.gmra.mxu2 %v1355_v1  ;;  %859 = vmatmul.f32.gmra.mxu3 %v1402_v23  ;;  %v396_v1 = vld [vmem:[#allocation2 + $0x91] sm:$0xff] }
  0x82   : > { %1096 = vmatpush.msra.mxu2 %v535_v34 }
  0x83   : > { %631 = vmatmul.f32.gmra.mxu1 %v1373_v10  ;;  %754 = vmatmul.f32.gmra.mxu0 %v1641_v53 }
  0x84   : > { %1097 = vmatpush.msra.mxu2 %v534_v35 }
  0x86   : > { %1098 = vmatpush.msra.mxu2 %v533_v44 }
  0x89   : > { %824 = vmatmul.f32.gmra.mxu2 %v1410_v26  ;;  %862 = vmatmul.f32.gmra.mxu3 %v1263_v28  ;;  %v404_v26 = vld [vmem:[#allocation2 + $0x92] sm:$0xff] }
  0x8b   : > { %774 = vmatmul.f32.vlgmr.msra.gmra.mxu1 %v1444_v40  ;;  %897 = vmatmul.f32.vlgmr.msra.gmra.mxu0 %v1489_v57 }
  0x91   : > { %827 = vmatmul.f32.gmra.mxu2 %v1452_v43  ;;  %865 = vmatmul.f32.gmra.mxu3 %v1291_v38 }
  0x93   : > { %777 = vmatmul.f32.gmra.mxu1 %v1489_v57  ;;  %900 = vmatmul.f32.gmra.mxu0 %v1535_v12 }
  0x99   : > { %830 = vmatmul.f32.gmra.mxu2 %v1497_v60  ;;  %868 = vmatmul.f32.gmra.mxu3 %v1332_v54  ;;  %v403_v54 = vld [vmem:[#allocation2 + $0x82] sm:$0xff] }
  0x9b   : > { %780 = vmatmul.f32.gmra.mxu1 %v1535_v12  ;;  %903 = vmatmul.f32.gmra.mxu0 %v1581_v31 }
  0xa1   : > { %833 = vmatmul.f32.gmra.mxu2 %v363_v32  ;;  %871 = vmatmul.f32.gmra.mxu3 %v1373_v10 }
  0xa3   : > { %783 = vmatmul.f32.gmra.mxu1 %v1581_v31  ;;  %906 = vmatmul.f32.gmra.mxu0 %v1632_v50 }
  0xa8   : > { %v582_v28 = vpop.f32.mrf.mxu1  ;;  %v570_v38 = vpop.f32.mrf.mxu0 }
  0xa9   : > { %836 = vmatmul.f32.gmra.mxu2 %v1119_v2  ;;  %874 = vmatmul.f32.gmra.mxu3 %v1641_v53  ;;  %v571_v37 = vadd.f32 %v1110_v36, %v570_v38  ;;  %v583_v11 = vadd.f32 %v1110_v36, %v582_v28 }
  0xab   : > { %786 = vmatmul.f32.gmra.mxu1 %v1632_v50  ;;  %909 = vmatmul.f32.gmra.mxu0 %v1683_v5 }
  0xb0   : > { %v585_v6 = vpop.f32.mrf.mxu1  ;;  %v573_v23 = vpop.f32.mrf.mxu0 }
  0xb1   : > { %915 = vmatmul.f32.vlgmr.msra.gmra.mxu2 %v403_v54  ;;  %877 = vmatmul.f32.gmra.mxu3 %v396_v1  ;;  %v574_v47 = vadd.f32 %v1110_v36, %v573_v23 }
  0xb2   : > { %v652_v10 = vpop.f32.mrf.mxu2 }
  0xb3   : > { %789 = vmatmul.f32.gmra.mxu1 %v1683_v5  ;;  %912 = vmatmul.f32.gmra.mxu0 %v1720_v22 }
  0xb8   : > { %v588_v40 = vpop.f32.mrf.mxu1  ;;  %v576_v2 = vpop.f32.mrf.mxu0 }
  0xb9   : > { %918 = vmatmul.f32.gmra.mxu2 %v404_v26  ;;  %v693_v57 = vpop.f32.mrf.mxu3  ;;  %v577_v15 = vadd.f32 %v1110_v36, %v576_v2  ;;  %v589_v32 = vadd.f32 %v1110_v36, %v588_v40 }
  0xba   : > { %v655_v43 = vpop.f32.mrf.mxu2 }
  0xbb   : > { %792 = vmatmul.f32.gmra.mxu1 %v1720_v22  ;;  %v586_v22 = vadd.f32 %v1110_v36, %v585_v6 }
  0xc0   : > { %v591_v60 = vpop.f32.mrf.mxu1  ;;  %v579_v61 = vpop.f32.mrf.mxu0 }
  0xc1   : > { %v1795_v31 = vpop.f32.mrf.mxu3  ;;  %v580_v0 = vadd.f32 %v1110_v36, %v579_v61 }
  0xc2   : > { %v658_v12 = vpop.f32.mrf.mxu2 }
  0xc3   : > { %795 = vmatmul.f32.gmra.mxu1 %v403_v54  ;;  %v592_v54 = vadd.f32 %v1110_v36, %v591_v60 }
  0xc8   : > { %v611_v39 = vpop.f32.mrf.mxu1  ;;  %v734_v41 = vpop.f32.mrf.mxu0 }
  0xc9   : > { %v612_v42 = vadd.f32 %v611_v39, %v571_v37  ;;  %v1800_v49 = vpop.f32.mrf.mxu3 }
  0xca   : > { %v661_v46 = vpop.f32.mrf.mxu2 }
  0xcb   : > { %v653_v45 = vadd.f32 %v652_v10, %v612_v42 }
  0xcd   : > { %v694_v10 = vadd.f32 %v693_v57, %v653_v45 }
  0xcf   : > { %v735_v40 = vadd.f32 %v734_v41, %v694_v10 }
  0xd0   : > { %v614_v14 = vpop.f32.mrf.mxu1  ;;  %v737_v48 = vpop.f32.mrf.mxu0 }
  0xd1   : > { %v615_v50 = vadd.f32 %v614_v14, %v574_v47  ;;  %v1802_v53 = vpop.f32.mrf.mxu3 }
  0xd3   : > { %v656_v51 = vadd.f32 %v655_v43, %v615_v50  ;;  %v664_v52 = vpop.f32.mrf.mxu2 }
  0xd5   : > { %v697_v39 = vadd.f32 %v1795_v31, %v656_v51 }
  0xd7   : > { %v738_v57 = vadd.f32 %v737_v48, %v697_v39 }
  0xd8   : > { %v617_v55 = vpop.f32.mrf.mxu1  ;;  %v740_v56 = vpop.f32.mrf.mxu0 }
  0xd9   : > { %v618_v58 = vadd.f32 %v617_v55, %v577_v15 }
  0xda   : > { %v1804_v63 = vpop.f32.mrf.mxu3 }
  0xdb   : > { %v659_v59 = vadd.f32 %v658_v12, %v618_v58  ;;  %v667_v62 = vpop.f32.mrf.mxu2 }
  0xdd   : > { %v700_v31 = vadd.f32 %v1800_v49, %v659_v59 }
  0xdf   : > { %v741_v15 = vadd.f32 %v740_v56, %v700_v31 }
  0xe0   : > { %v620_v3 = vpop.f32.mrf.mxu1  ;;  %v1806_v4 = vpop.f32.mrf.mxu0 }
  0xe1   : > { %v621_v5 = vadd.f32 %v620_v3, %v580_v0 }
  0xe3   : > { %v662_v7 = vadd.f32 %v661_v46, %v621_v5  ;;  %v670_v8 = vpop.f32.mrf.mxu2 }
  0xe4   : > { %v1808_v9 = vpop.f32.mrf.mxu3 }
  0xe8   : > { %v623_v13 = vpop.f32.mrf.mxu1  ;;  %v1810_v16 = vpop.f32.mrf.mxu0 }
  0xe9   : > { %v624_v17 = vadd.f32 %v623_v13, %v583_v11  ;;  %v703_v11 = vadd.f32 %v1802_v53, %v662_v7 }
  0xeb   : > { %v1812_v18 = vadd.f32 %v664_v52, %v624_v17  ;;  %v673_v19 = vpop.f32.mrf.mxu2  ;;  %v744_v59 = vadd.f32 %v1806_v4, %v703_v11 }
  0xec   : > { %v1814_v20 = vpop.f32.mrf.mxu3 }
  0xf0   : > { %v626_v24 = vpop.f32.mrf.mxu1  ;;  %v1816_v25 = vpop.f32.mrf.mxu0 }
  0xf1   : > { %v627_v21 = vadd.f32 %v626_v24, %v586_v22 }
  0xf3   : > { %v1818_v29 = vadd.f32 %v667_v62, %v627_v21  ;;  %v816_v30 = vpop.f32.mrf.mxu2 }
  0xf4   : > { %v1820_v27 = vpop.f32.mrf.mxu3 }
  0xf8   : > { %v629_v33 = vpop.f32.mrf.mxu1  ;;  %v1822_v34 = vpop.f32.mrf.mxu0 }
  0xf9   : > { %v630_v35 = vadd.f32 %v629_v33, %v589_v32  ;;  %v706_v33 = vadd.f32 %v1804_v63, %v1812_v18 }
  0xfb   : > { %v1824_v44 = vadd.f32 %v670_v8, %v630_v35 }
  0xfc   : > { %v819_v28 = vpop.f32.mrf.mxu2  ;;  %v857_v38 = vpop.f32.mrf.mxu3 }
 0x100   : > { %v632_v1 = vpop.f32.mrf.mxu1  ;;  %v1826_v6 = vpop.f32.mrf.mxu0 }
 0x101   : > { %v633_v23 = vadd.f32 %v632_v1, %v592_v54  ;;  %v747_v54 = vadd.f32 %v1810_v16, %v706_v33 }
 0x103   : > { %v1828_v26 = vadd.f32 %v673_v19, %v633_v23 }
 0x104   : > { %v822_v2 = vpop.f32.mrf.mxu2  ;;  %v860_v43 = vpop.f32.mrf.mxu3 }
 0x108   : > { %v775_v61 = vpop.f32.mrf.mxu1  ;;  %v898_v12 = vpop.f32.mrf.mxu0 }
 0x109   : > { %v776_v37 = vadd.f32 %v775_v61, %v735_v40  ;;  %v709_v40 = vadd.f32 %v1808_v9, %v1818_v29 }
 0x10b   : > { %v817_v42 = vadd.f32 %v816_v30, %v776_v37  ;;  %v750_v37 = vadd.f32 %v1816_v25, %v709_v40 }
 0x10c   : > { %v825_v46 = vpop.f32.mrf.mxu2  ;;  %v863_v36 = vpop.f32.mrf.mxu3 }
 0x10d   : > { %v858_v47 = vadd.f32 %v857_v38, %v817_v42 }
 0x10f   : > { %v899_v60 = vadd.f32 %v898_v12, %v858_v47 }
 0x110   : > { %v778_v41 = vpop.f32.mrf.mxu1  ;;  %v901_v45 = vpop.f32.mrf.mxu0 }
 0x111   : > { %922 = vst [vmem:[%s1836_s14] sm:$0xff] %v899_v60  ;;  %v779_v14 = vadd.f32 %v778_v41, %v738_v57  ;;  %v943_v0 = vmul.f32 %v899_v60, %v899_v60 }
 0x113   : > { %v820_v50 = vadd.f32 %v819_v28, %v779_v14 }
 0x114   : > { %v828_v51 = vpop.f32.mrf.mxu2  ;;  %v866_v8 = vpop.f32.mrf.mxu3 }
 0x115   : > { %v861_v52 = vadd.f32 %v860_v43, %v820_v50 }
 0x117   : > { %v902_v55 = vadd.f32 %v901_v45, %v861_v52 }
 0x118   : > { %v781_v58 = vpop.f32.mrf.mxu1  ;;  %v904_v62 = vpop.f32.mrf.mxu0 }
 0x119   : > { %923 = vst [vmem:[%s1836_s14 + $0x8] sm:$0xff] %v902_v55  ;;  %v930_v48 = vadd.f32 %v902_v55, %v899_v60  ;;  %v944_v3 = vmul.f32 %v902_v55, %v902_v55  ;;  %v782_v5 = vadd.f32 %v781_v58, %v741_v15  ;;  %v712_v60 = vadd.f32 %v1814_v20, %v1824_v44 }
 0x11a   : > { %v715_v55 = vadd.f32 %v1820_v27, %v1828_v26 }
 0x11b   : > { %v951_v13 = vadd.f32 %v944_v3, %v943_v0  ;;  %v823_v17 = vadd.f32 %v822_v2, %v782_v5  ;;  %v753_v45 = vadd.f32 %v1822_v34, %v712_v60 }
 0x11c   : > { %v831_v19 = vpop.f32.mrf.mxu2  ;;  %v869_v53 = vpop.f32.mrf.mxu3 }
 0x11d   : > { %v864_v49 = vadd.f32 %v863_v36, %v823_v17 }
 0x11f   : > { %v905_v22 = vadd.f32 %v904_v62, %v864_v49  ;;  %v756_v62 = vadd.f32 %v1826_v6, %v715_v55 }
 0x120   : > { %v784_v56 = vpop.f32.mrf.mxu1  ;;  %v907_v24 = vpop.f32.mrf.mxu0 }
 0x121   : > { %924 = vst [vmem:[%s1836_s14 + $0x10] sm:$0xff] %v905_v22  ;;  %v931_v21 = vadd.f32 %v930_v48, %v905_v22  ;;  %v945_v30 = vmul.f32 %v905_v22, %v905_v22  ;;  %v785_v32 = vadd.f32 %v784_v56, %v744_v59 }
 0x123   : > { %v952_v35 = vadd.f32 %v951_v13, %v945_v30  ;;  %v826_v28 = vadd.f32 %v825_v46, %v785_v32 }
 0x124   : > { %v834_v38 = vpop.f32.mrf.mxu2  ;;  %v872_v12 = vpop.f32.mrf.mxu3 }
 0x125   : > { %v867_v7 = vadd.f32 %v866_v8, %v826_v28 }
 0x127   : > { %v908_v1 = vadd.f32 %v907_v24, %v867_v7 }
 0x128   : > { %v787_v4 = vpop.f32.mrf.mxu1  ;;  %v910_v43 = vpop.f32.mrf.mxu0 }
 0x129   : > { %925 = vst [vmem:[%s1836_s14 + $0x18] sm:$0xff] %v908_v1  ;;  %v932_v23 = vadd.f32 %v931_v21, %v908_v1  ;;  %v946_v10 = vmul.f32 %v908_v1, %v908_v1  ;;  %v788_v2 = vadd.f32 %v787_v4, %v747_v54 }
 0x12b   : > { %v953_v61 = vadd.f32 %v952_v35, %v946_v10  ;;  %v829_v63 = vadd.f32 %v828_v51, %v788_v2 }
 0x12c   : > { %v837_v42 = vpop.f32.mrf.mxu2  ;;  %v875_v31 = vpop.f32.mrf.mxu3 }
 0x12d   : > { %v870_v18 = vadd.f32 %v869_v53, %v829_v63 }
 0x12f   : > { %v911_v39 = vadd.f32 %v910_v43, %v870_v18 }
 0x130   : > { %v790_v16 = vpop.f32.mrf.mxu1  ;;  %v913_v9 = vpop.f32.mrf.mxu0 }
 0x131   : > { %926 = vst [vmem:[%s1836_s14 + $0x20] sm:$0xff] %v911_v39  ;;  %v933_v46 = vadd.f32 %v932_v23, %v911_v39  ;;  %v947_v47 = vmul.f32 %v911_v39, %v911_v39  ;;  %v791_v57 = vadd.f32 %v790_v16, %v750_v37 }
 0x133   : > { %v954_v36 = vadd.f32 %v953_v61, %v947_v47  ;;  %v832_v41 = vadd.f32 %v831_v19, %v791_v57 }
 0x134   : > { %v916_v15 = vpop.f32.mrf.mxu2  ;;  %v878_v8 = vpop.f32.mrf.mxu3 }
 0x135   : > { %v873_v29 = vadd.f32 %v872_v12, %v832_v41 }
 0x137   : > { %v914_v14 = vadd.f32 %v913_v9, %v873_v29 }
 0x138   : > { %v793_v25 = vpop.f32.mrf.mxu1 }
 0x139   : > { %927 = vst [vmem:[%s1836_s14 + $0x28] sm:$0xff] %v914_v14  ;;  %v934_v50 = vadd.f32 %v933_v46, %v914_v14  ;;  %v948_v51 = vmul.f32 %v914_v14, %v914_v14  ;;  %v794_v52 = vadd.f32 %v793_v25, %v753_v45 }
 0x13b   : > { %v955_v58 = vadd.f32 %v954_v36, %v948_v51  ;;  %v835_v20 = vadd.f32 %v834_v38, %v794_v52 }
 0x13c   : > { %v919_v17 = vpop.f32.mrf.mxu2 }
 0x13d   : > { %v876_v44 = vadd.f32 %v875_v31, %v835_v20 }
 0x13f   : > { %v917_v0 = vadd.f32 %v916_v15, %v876_v44 }
 0x140   : > { %v796_v34 = vpop.f32.mrf.mxu1 }
 0x141   : > { %928 = vst [vmem:[%s1836_s14 + $0x30] sm:$0xff] %v917_v0  ;;  %v935_v48 = vadd.f32 %v934_v50, %v917_v0  ;;  %v949_v3 = vmul.f32 %v917_v0, %v917_v0  ;;  %v797_v5 = vadd.f32 %v796_v34, %v756_v62 }
 0x143   : > { %v956_v11 = vadd.f32 %v955_v58, %v949_v3  ;;  %v838_v13 = vadd.f32 %v837_v42, %v797_v5 }
 0x145   : > { %v879_v19 = vadd.f32 %v878_v8, %v838_v13 }
 0x147   : > { %v920_v49 = vadd.f32 %v919_v17, %v879_v19 }
 0x149   : > { %929 = vst [vmem:[%s1836_s14 + $0x38] sm:$0xff] %v920_v49  ;;  %v936_v27 = vadd.f32 %v935_v48, %v920_v49  ;;  %v950_v26 = vmul.f32 %v920_v49, %v920_v49 }
 0x14b   : > { %v937_v59 = vrot.slane %v936_v27, 4  ;;  %v957_v22 = vadd.f32 %v956_v11, %v950_v26 }
 0x14d   : > { %v938_v56 = vadd.f32 %v937_v59, %v936_v27  ;;  %v958_v6 = vrot.slane %v957_v22, 4 }
 0x14f   : > { %v939_v24 = vrot.slane %v938_v56, 2  ;;  %v959_v21 = vadd.f32 %v958_v6, %v957_v22 }
 0x151   : > { %v940_v30 = vadd.f32 %v939_v24, %v938_v56  ;;  %v960_v32 = vrot.slane %v959_v21, 2 }
 0x153   : > { %v941_v33 = vrot.slane %v940_v30, 1  ;;  %v961_v35 = vadd.f32 %v960_v32, %v959_v21 }
 0x155   : > { %v962_v28 = vrot.slane %v961_v35, 1  ;;  %v942_v53 = vadd.f32 %v941_v33, %v940_v30 }
 0x157   : > { %v963_v7 = vadd.f32 %v962_v28, %v961_v35 }
 0x159   : > { %v965_v38 = vsel %vm964_vm0, %v942_v53, %v963_v7 }
 0x15a   : > { %966 = vst [vmem:[%s262_s18] sm:$0x3] %v965_v38 }
 0x15b PF: > { %s17_s21 = sadd.s32 1, %s1117_s21  }
 0x15c   : > { %p14_p4 = scmp.ge.s32.totalorder %s17_s21, 4  }
 0x15e   :  { %16 = sbr.rel (!%p14_p4) target bundleno = 1 (0x1), region = 84 }

// kernel: downsample_forward.3
= control target key start
LH: loop header
LB: loop body
LE: loop exit
PB: predicated region body
PF: predicated region fallthrough
CT: control target
= control target key end

     0   :  { %s1105_s15 = smov 0   ;;  %s1816_s0 = inlined_call_operand.vmem [shape: f32[2,16,8,256], index: 0, kind: input, shape index: {}]   ;;  %s1817_s1 = inlined_call_operand.vmem [shape: f32[1152,128], index: 1, kind: input, shape index: {}]   ;;  %s1818_s2 = inlined_call_operand.vmem [shape: f32[1,128], index: 2, kind: input, shape index: {}]   ;;  %s1819_s3 = inlined_call_operand.vmem [shape: f32[2,8,8,128], index: 3, kind: output, shape index: {0}]   ;;  %s1820_s4 = inlined_call_operand.vmem [shape: f32[2,2,128], index: 4, kind: output, shape index: {1}]  }
   0x1 LB: > { %s1015_s16 = sadd.s32 4294967295, %s1077_s15   ;;  %p1019_p0 = scmp.ge.s32.totalorder %s1077_s15, 1  ;;  %s1077_s15 = sphi %s1105_s15, %s15_s15  }
   0x2   : > { %p165_p1 = scmp.lt.s32.totalorder %s1077_s15, 3 }
   0x4   : > { %p166_p2 = pnand %p1019_p0, %p165_p1 }
   0x5   : > { %p195_p3 = scmp.lt.s32.totalorder (!%p166_p2), %s1015_s16, 1 }
   0x6   : > { %169 = sbr.rel (%p166_p2) target bundleno = 347 (0x15b), region = 32 }
   0xb   : > { %v382_v0 = vld [vmem:[%s1817_s1 + $0x78] sm:$0xff]  ;;  %v381_v1 = vld [vmem:[%s1817_s1 + $0x70] sm:$0xff]  ;;  %v1079_v2 = vmov 0.0   ;;  %v380_v3 = vld [vmem:[%s1817_s1 + $0x68] sm:$0xff]  ;;  %s1822_s16 = smov (!%p195_p3, %s1015_s16), 1  ;;  %vm926_vm0 = vcmask 1040384  }
   0xc   : > { %1029 = vmatpush.msra.mxu1 %v382_v0  ;;  %515 = vmatpush.msra.mxu0 %v382_v0  ;;  %273 = vst [vmem:[#allocation2 + $0x40] sm:$0xff] %v1079_v2  ;;  %v414_v4 = vld [vmem:[%s1817_s1 + $0x178] sm:$0xff]  ;;  %v413_v5 = vld [vmem:[%s1817_s1 + $0x170] sm:$0xff]  ;;  %v379_v6 = vld [vmem:[%s1817_s1 + $0x60] sm:$0xff]  ;;  %s1027_s29 = sshll.u32 %s1822_s16, 8  ;;  %s1028_s5 = sshll.u32 %s1822_s16, 6 }
   0xd   : > { %274 = vst [vmem:[#allocation2 + $0x48] sm:$0x3] %v1079_v2  ;;  %597 = vmatpush.msra.mxu2 %v414_v4  ;;  %v412_v7 = vld [vmem:[%s1817_s1 + $0x168] sm:$0xff]  ;;  %s1144_s8 = scalar_lea.vmem %s1816_s0, %s1027_s29  ;;  %v378_v8 = vld [vmem:[%s1817_s1 + $0x58] sm:$0xff]  ;;  %v377_v9 = vld [vmem:[%s1817_s1 + $0x50] sm:$0xff]  ;;  %s1783_s9 = scalar_lea.vmem %s1819_s3, %s1028_s5 }
   0xe   : > { %1030 = vmatpush.msra.mxu1 %v381_v1  ;;  %516 = vmatpush.msra.mxu0 %v381_v1  ;;  %265 = vst [vmem:[#allocation2] sm:$0xff] %v1079_v2  ;;  %v411_v10 = vld [vmem:[%s1817_s1 + $0x160] sm:$0xff]  ;;  %v430_v11 = vld [vmem:[%s1817_s1 + $0x1f8] sm:$0xff]  ;;  %v222_v13 = vld [vmem:[%s1144_s8 + $0x68] sm:$0xff]  ;;  %s1024_s10 = sshll.u32 %s1822_s16, 1 }
   0xf   : > { %266 = vst [vmem:[#allocation2 + $0x8] sm:$0x3] %v1079_v2  ;;  %598 = vmatpush.msra.mxu2 %v413_v5  ;;  %v221_v12 = vld [vmem:[%s1144_s8 + $0x60] sm:$0xff]  ;;  %v410_v14 = vld [vmem:[%s1817_s1 + $0x158] sm:$0xff]  ;;  %v223_v15 = vld [vmem:[%s1144_s8 + $0x70] sm:$0xff]  ;;  %638 = vmatpush.msra.mxu3 %v430_v11  ;;  %s208_s13 = scalar_lea.vmem %s1820_s4, %s1024_s10 }
  0x10   : > { %1031 = vmatpush.msra.mxu1 %v380_v3  ;;  %517 = vmatpush.msra.mxu0 %v380_v3  ;;  %267 = vst [vmem:[#allocation2 + $0x10] sm:$0xff] %v1079_v2  ;;  %v224_v16 = vld [vmem:[%s1144_s8 + $0x78] sm:$0xff]  ;;  %v247_v17 = vmax.f32 %v221_v12, %v222_v13  ;;  %v376_v18 = vld [vmem:[%s1817_s1 + $0x48] sm:$0xff]  ;;  %v429_v20 = vld [vmem:[%s1817_s1 + $0x1f0] sm:$0xff] }
  0x11   : > { %268 = vst [vmem:[#allocation2 + $0x18] sm:$0x3] %v1079_v2  ;;  %599 = vmatpush.msra.mxu2 %v412_v7  ;;  %v248_v19 = vmax.f32 %v223_v15, %v224_v16  ;;  %v409_v21 = vld [vmem:[%s1817_s1 + $0x150] sm:$0xff]  ;;  %v428_v22 = vld [vmem:[%s1817_s1 + $0x1e8] sm:$0xff]  ;;  %v375_v23 = vld [vmem:[%s1817_s1 + $0x40] sm:$0xff]  ;;  %639 = vmatpush.msra.mxu3 %v429_v20 }
  0x12   : > { %1032 = vmatpush.msra.mxu1 %v379_v6  ;;  %518 = vmatpush.msra.mxu0 %v379_v6  ;;  %269 = vst [vmem:[#allocation2 + $0x20] sm:$0xff] %v1079_v2  ;;  %v374_v25 = vld [vmem:[%s1817_s1 + $0x38] sm:$0xff]  ;;  %v408_v26 = vld [vmem:[%s1817_s1 + $0x148] sm:$0xff]  ;;  %v427_v27 = vld [vmem:[%s1817_s1 + $0x1e0] sm:$0xff] }
  0x13   : > { %270 = vst [vmem:[#allocation2 + $0x28] sm:$0x3] %v1079_v2  ;;  %600 = vmatpush.msra.mxu2 %v411_v10  ;;  %v1187_v24 = vmax.f32 %v247_v17, %v248_v19  ;;  %640 = vmatpush.msra.mxu3 %v428_v22  ;;  %v225_v28 = vld [vmem:[%s1144_s8 + $0x80] sm:$0xff]  ;;  %v226_v29 = vld [vmem:[%s1144_s8 + $0x88] sm:$0xff]  ;;  %v227_v30 = vld [vmem:[%s1144_s8 + $0x90] sm:$0xff] }
  0x14   : > { %1033 = vmatpush.msra.mxu1 %v378_v8  ;;  %519 = vmatpush.msra.mxu0 %v378_v8  ;;  %271 = vst [vmem:[#allocation2 + $0x30] sm:$0xff] %v1079_v2  ;;  %v407_v31 = vld [vmem:[%s1817_s1 + $0x140] sm:$0xff]  ;;  %v426_v32 = vld [vmem:[%s1817_s1 + $0x1d8] sm:$0xff]  ;;  %v249_v34 = vmax.f32 %v225_v28, %v226_v29  ;;  %v373_v35 = vld [vmem:[%s1817_s1 + $0x30] sm:$0xff] }
  0x15   : > { %272 = vst [vmem:[#allocation2 + $0x38] sm:$0x3] %v1079_v2  ;;  %601 = vmatpush.msra.mxu2 %v410_v14  ;;  %v228_v33 = vld [vmem:[%s1144_s8 + $0x98] sm:$0xff]  ;;  %641 = vmatpush.msra.mxu3 %v427_v27  ;;  %v425_v38 = vld [vmem:[%s1817_s1 + $0x1d0] sm:$0xff]  ;;  %v372_v39 = vld [vmem:[%s1817_s1 + $0x28] sm:$0xff] }
  0x16   : > { %1034 = vmatpush.msra.mxu1 %v377_v9  ;;  %520 = vmatpush.msra.mxu0 %v377_v9  ;;  %275 = vst [vmem:[#allocation2 + $0x50] sm:$0xff] %v1079_v2  ;;  %v250_v36 = vmax.f32 %v227_v30, %v228_v33  ;;  %v406_v37 = vld [vmem:[%s1817_s1 + $0x138] sm:$0xff]  ;;  %v405_v40 = vld [vmem:[%s1817_s1 + $0x130] sm:$0xff]  ;;  %v424_v42 = vld [vmem:[%s1817_s1 + $0x1c8] sm:$0xff] }
  0x17   : > { %276 = vst [vmem:[#allocation2 + $0x58] sm:$0x3] %v1079_v2  ;;  %602 = vmatpush.msra.mxu2 %v409_v21  ;;  %642 = vmatpush.msra.mxu3 %v426_v32  ;;  %v209_v43 = vld [vmem:[%s1144_s8] sm:$0xff]  ;;  %v210_v44 = vld [vmem:[%s1144_s8 + $0x8] sm:$0xff]  ;;  %v211_v46 = vld [vmem:[%s1144_s8 + $0x10] sm:$0xff] }
  0x18   : > { %1035 = vmatpush.msra.mxu1 %v376_v18  ;;  %521 = vmatpush.msra.mxu0 %v376_v18  ;;  %277 = vst [vmem:[#allocation2 + $0x60] sm:$0xff] %v1079_v2  ;;  %v1230_v41 = vmax.f32 %v249_v34, %v250_v36  ;;  %v371_v45 = vld [vmem:[%s1817_s1 + $0x20] sm:$0xff]  ;;  %v212_v47 = vld [vmem:[%s1144_s8 + $0x18] sm:$0xff]  ;;  %v241_v48 = vmax.f32 %v209_v43, %v210_v44  ;;  %v404_v50 = vld [vmem:[%s1817_s1 + $0x128] sm:$0xff] }
  0x19   : > { %289 = vst [vmem:[#allocation2 + $0x41] sm:$0xff] %v1187_v24  ;;  %603 = vmatpush.msra.mxu2 %v408_v26  ;;  %643 = vmatpush.msra.mxu3 %v425_v38  ;;  %v370_v49 = vld [vmem:[%s1817_s1 + $0x18] sm:$0xff]  ;;  %v423_v51 = vld [vmem:[%s1817_s1 + $0x1c0] sm:$0xff]  ;;  %v242_v52 = vmax.f32 %v211_v46, %v212_v47  ;;  %v230_v55 = vld [vmem:[%s1144_s8 + $0xa8] sm:$0xff] }
  0x1a   : > { %1036 = vmatpush.msra.mxu1 %v375_v23  ;;  %522 = vmatpush.msra.mxu0 %v375_v23  ;;  %278 = vst [vmem:[#allocation2 + $0x68] sm:$0x3] %v1079_v2  ;;  %v403_v53 = vld [vmem:[%s1817_s1 + $0x120] sm:$0xff]  ;;  %v422_v57 = vld [vmem:[%s1817_s1 + $0x1b8] sm:$0xff]  ;;  %v231_v58 = vld [vmem:[%s1144_s8 + $0xb0] sm:$0xff] }
  0x1b   : > { %279 = vst [vmem:[#allocation2 + $0x70] sm:$0xff] %v1079_v2  ;;  %604 = vmatpush.msra.mxu2 %v407_v31  ;;  %644 = vmatpush.msra.mxu3 %v424_v42  ;;  %v229_v54 = vld [vmem:[%s1144_s8 + $0xa0] sm:$0xff]  ;;  %v1260_v56 = vmax.f32 %v241_v48, %v242_v52  ;;  %v232_v59 = vld [vmem:[%s1144_s8 + $0xb8] sm:$0xff]  ;;  %v369_v61 = vld [vmem:[%s1817_s1 + $0x10] sm:$0xff] }
  0x1c   : > { %1037 = vmatpush.msra.mxu1 %v374_v25  ;;  %523 = vmatpush.msra.mxu0 %v374_v25  ;;  %280 = vst [vmem:[#allocation2 + $0x78] sm:$0x3] %v1079_v2  ;;  %v251_v60 = vmax.f32 %v229_v54, %v230_v55  ;;  %v252_v62 = vmax.f32 %v231_v58, %v232_v59  ;;  %v402_v63 = vld [vmem:[%s1817_s1 + $0x118] sm:$0xff]  ;;  %v421_v0 = vld [vmem:[%s1817_s1 + $0x1b0] sm:$0xff]  ;;  %v368_v1 = vld [vmem:[%s1817_s1 + $0x8] sm:$0xff] }
  0x1d   : > { %281 = vst [vmem:[#allocation2 + $0x80] sm:$0xff] %v1079_v2  ;;  %605 = vmatpush.msra.mxu2 %v406_v37  ;;  %645 = vmatpush.msra.mxu3 %v423_v51  ;;  %v367_v3 = vld [vmem:[%s1817_s1] sm:$0xff]  ;;  %v401_v5 = vld [vmem:[%s1817_s1 + $0x110] sm:$0xff]  ;;  %v420_v6 = vld [vmem:[%s1817_s1 + $0x1a8] sm:$0xff] }
  0x1e   : > { %1038 = vmatpush.msra.mxu1 %v373_v35  ;;  %524 = vmatpush.msra.mxu0 %v373_v35  ;;  %282 = vst [vmem:[#allocation2 + $0x88] sm:$0x3] %v1079_v2  ;;  %v1283_v4 = vmax.f32 %v251_v60, %v252_v62  ;;  %v213_v7 = vld [vmem:[%s1144_s8 + $0x20] sm:$0xff]  ;;  %v214_v8 = vld [vmem:[%s1144_s8 + $0x28] sm:$0xff]  ;;  %v215_v9 = vld [vmem:[%s1144_s8 + $0x30] sm:$0xff] }
  0x1f   : > { %283 = vst [vmem:[#allocation2 + $0x90] sm:$0xff] %v1079_v2  ;;  %606 = vmatpush.msra.mxu2 %v405_v40  ;;  %646 = vmatpush.msra.mxu3 %v422_v57  ;;  %v216_v10 = vld [vmem:[%s1144_s8 + $0x38] sm:$0xff]  ;;  %v243_v14 = vmax.f32 %v213_v7, %v214_v8  ;;  %v400_v16 = vld [vmem:[%s1817_s1 + $0x108] sm:$0xff]  ;;  %v233_v17 = vld [vmem:[%s1144_s8 + $0xc0] sm:$0xff] }
  0x20   : > { %1039 = vmatpush.msra.mxu1 %v372_v39  ;;  %525 = vmatpush.msra.mxu0 %v372_v39  ;;  %284 = vst [vmem:[#allocation2 + $0x98] sm:$0x3] %v1079_v2  ;;  %v1296_v11 = vld [vmem:[#allocation2 + $0x40] sm:$0xff]  ;;  %v398_v12 = vld [vmem:[%s1817_s1 + $0xf8] sm:$0xff]  ;;  %v244_v15 = vmax.f32 %v215_v9, %v216_v10  ;;  %v234_v18 = vld [vmem:[%s1144_s8 + $0xc8] sm:$0xff] }
  0x21   : > { %290 = vst [vmem:[#allocation2 + $0x51] sm:$0xff] %v1230_v41  ;;  %607 = vmatpush.msra.mxu2 %v404_v50  ;;  %647 = vmatpush.msra.mxu3 %v421_v0  ;;  %v446_v13 = vld [vmem:[%s1817_s1 + $0x278] sm:$0xff]  ;;  %v419_v19 = vld [vmem:[%s1817_s1 + $0x1a0] sm:$0xff]  ;;  %v235_v21 = vld [vmem:[%s1144_s8 + $0xd0] sm:$0xff]  ;;  %v253_v23 = vmax.f32 %v233_v17, %v234_v18 }
  0x22   : > { %1040 = vmatpush.msra.mxu1 %v371_v45  ;;  %526 = vmatpush.msra.mxu0 %v371_v45  ;;  %286 = vst [vmem:[#allocation2 + $0x11] sm:$0xff] %v1260_v56  ;;  %v1312_v20 = vmax.f32 %v243_v14, %v244_v15  ;;  %v236_v22 = vld [vmem:[%s1144_s8 + $0xd8] sm:$0xff]  ;;  %v397_v25 = vld [vmem:[%s1817_s1 + $0xf0] sm:$0xff]  ;;  %v399_v28 = vld [vmem:[%s1817_s1 + $0x100] sm:$0xff] }
  0x23   : > { %608 = vmatpush.msra.mxu2 %v403_v53  ;;  %291 = vst [vmem:[#allocation2 + $0x61] sm:$0xff] %v1283_v4  ;;  %648 = vmatpush.msra.mxu3 %v420_v6  ;;  %v445_v26 = vld [vmem:[%s1817_s1 + $0x270] sm:$0xff]  ;;  %v254_v27 = vmax.f32 %v235_v21, %v236_v22  ;;  %v418_v29 = vld [vmem:[%s1817_s1 + $0x198] sm:$0xff]  ;;  %v396_v30 = vld [vmem:[%s1817_s1 + $0xe8] sm:$0xff] }
  0x24   : > { %1041 = vmatpush.msra.mxu1 %v370_v49  ;;  %527 = vmatpush.msra.mxu0 %v370_v49  ;;  %287 = vst [vmem:[#allocation2 + $0x21] sm:$0xff] %v1312_v20  ;;  %v395_v31 = vld [vmem:[%s1817_s1 + $0xe0] sm:$0xff]  ;;  %v444_v32 = vld [vmem:[%s1817_s1 + $0x268] sm:$0xff]  ;;  %v417_v36 = vld [vmem:[%s1817_s1 + $0x190] sm:$0xff] }
  0x25   : > { %609 = vmatpush.msra.mxu2 %v402_v63  ;;  %649 = vmatpush.msra.mxu3 %v419_v19  ;;  %v1340_v33 = vmax.f32 %v253_v23, %v254_v27  ;;  %v443_v34 = vld [vmem:[%s1817_s1 + $0x260] sm:$0xff]  ;;  %v218_v39 = vld [vmem:[%s1144_s8 + $0x48] sm:$0xff]  ;;  %v219_v42 = vld [vmem:[%s1144_s8 + $0x50] sm:$0xff] }
  0x26   : > { %1042 = vmatpush.msra.mxu1 %v369_v61  ;;  %528 = vmatpush.msra.mxu0 %v369_v61  ;;  %v310_v35 = vld [vmem:[#allocation2 + $0x2] sm:$0xff]  ;;  %v220_v43 = vld [vmem:[%s1144_s8 + $0x58] sm:$0xff]  ;;  %v393_v50 = vld [vmem:[%s1817_s1 + $0xd0] sm:$0xff] }
  0x27   : > { %610 = vmatpush.msra.mxu2 %v401_v5  ;;  %650 = vmatpush.msra.mxu3 %v418_v29  ;;  %292 = vst [vmem:[#allocation2 + $0x71] sm:$0xff] %v1340_v33  ;;  %v217_v38 = vld [vmem:[%s1144_s8 + $0x40] sm:$0xff]  ;;  %v394_v45 = vld [vmem:[%s1817_s1 + $0xd8] sm:$0xff]  ;;  %v246_v47 = vmax.f32 %v219_v42, %v220_v43  ;;  %v416_v49 = vld [vmem:[%s1817_s1 + $0x188] sm:$0xff] }
  0x28   : > { %1043 = vmatpush.msra.mxu1 %v368_v1  ;;  %529 = vmatpush.msra.mxu0 %v368_v1  ;;  %v1348_v37 = vld [vmem:[#allocation2 + $0x50] sm:$0xff]  ;;  %v245_v44 = vmax.f32 %v217_v38, %v218_v39  ;;  %v442_v46 = vld [vmem:[%s1817_s1 + $0x258] sm:$0xff]  ;;  %v415_v54 = vld [vmem:[%s1817_s1 + $0x180] sm:$0xff] }
  0x29   : > { %611 = vmatpush.msra.mxu2 %v400_v16  ;;  %v295_v40 = vld [vmem:[#allocation2 + $0x10] sm:$0xff]  ;;  %651 = vmatpush.msra.mxu3 %v417_v36  ;;  %v478_v48 = vld [vmem:[%s1817_s1 + $0x378] sm:$0xff]  ;;  %v392_v55 = vld [vmem:[%s1817_s1 + $0xc8] sm:$0xff] }
  0x2a   : > { %1044 = vmatpush.msra.mxu1 %v367_v3  ;;  %530 = vmatpush.msra.mxu0 %v367_v3  ;;  %v441_v51 = vld [vmem:[%s1817_s1 + $0x250] sm:$0xff]  ;;  %v1374_v52 = vmax.f32 %v245_v44, %v246_v47  ;;  %v440_v57 = vld [vmem:[%s1817_s1 + $0x248] sm:$0xff]  ;;  %v391_v59 = vld [vmem:[%s1817_s1 + $0xc0] sm:$0xff] }
  0x2b   : > { %543 = vmatmul.f32.vlgmr.msra.gmra.mxu1 %v1296_v11  ;;  %531 = vmatmul.f32.vlgmr.msra.gmra.mxu0 %v1079_v2  ;;  %v477_v53 = vld [vmem:[%s1817_s1 + $0x370] sm:$0xff]  ;;  %v439_v60 = vld [vmem:[%s1817_s1 + $0x240] sm:$0xff]  ;;  %v390_v63 = vld [vmem:[%s1817_s1 + $0xb8] sm:$0xff] }
  0x2c   : > { %556 = vmatpush.msrb.mxu1 %v398_v12  ;;  %679 = vmatpush.msrb.mxu0 %v446_v13  ;;  %288 = vst [vmem:[#allocation2 + $0x31] sm:$0xff] %v1374_v52  ;;  %v1389_v58 = vld [vmem:[#allocation2 + $0x12] sm:$0xff]  ;;  %v1397_v61 = vld [vmem:[#allocation2 + $0x60] sm:$0xff]  ;;  %v476_v1 = vld [vmem:[%s1817_s1 + $0x368] sm:$0xff] }
  0x2d   : > { %612 = vmatpush.msra.mxu2 %v399_v28  ;;  %652 = vmatpush.msra.mxu3 %v416_v49  ;;  %v1399_v62 = vld [vmem:[#allocation2 + $0x20] sm:$0xff]  ;;  %v438_v0 = vld [vmem:[%s1817_s1 + $0x238] sm:$0xff]  ;;  %v389_v5 = vld [vmem:[%s1817_s1 + $0xb0] sm:$0xff] }
  0x2e   : > { %557 = vmatpush.msrb.mxu1 %v397_v25  ;;  %680 = vmatpush.msrb.mxu0 %v445_v26  ;;  %v494_v3 = vld [vmem:[%s1817_s1 + $0x3f8] sm:$0xff]  ;;  %v437_v6 = vld [vmem:[%s1817_s1 + $0x230] sm:$0xff]  ;;  %v475_v7 = vld [vmem:[%s1817_s1 + $0x360] sm:$0xff] }
  0x2f   : > { %613 = vmatmul.f32.vlgmr.msra.gmra.mxu2 %v310_v35  ;;  %653 = vmatpush.msra.mxu3 %v415_v54  ;;  %v493_v8 = vld [vmem:[%s1817_s1 + $0x3f0] sm:$0xff]  ;;  %v388_v9 = vld [vmem:[%s1817_s1 + $0xa8] sm:$0xff]  ;;  %v387_v13 = vld [vmem:[%s1817_s1 + $0xa0] sm:$0xff] }
  0x30   : > { %558 = vmatpush.msrb.mxu1 %v396_v30  ;;  %681 = vmatpush.msrb.mxu0 %v444_v32  ;;  %v436_v10 = vld [vmem:[%s1817_s1 + $0x228] sm:$0xff]  ;;  %v435_v14 = vld [vmem:[%s1817_s1 + $0x220] sm:$0xff]  ;;  %v1442_v15 = vld [vmem:[#allocation2 + $0x70] sm:$0xff] }
  0x31   : > { %761 = vmatpush.msrb.mxu2 %v478_v48  ;;  %654 = vmatmul.f32.vlgmr.msra.gmra.mxu3 %v295_v40  ;;  %v1434_v12 = vld [vmem:[#allocation2 + $0x22] sm:$0xff]  ;;  %v386_v17 = vld [vmem:[%s1817_s1 + $0x98] sm:$0xff]  ;;  %v385_v22 = vld [vmem:[%s1817_s1 + $0x90] sm:$0xff] }
  0x32   : > { %559 = vmatpush.msrb.mxu1 %v395_v31  ;;  %682 = vmatpush.msrb.mxu0 %v443_v34  ;;  %v434_v18 = vld [vmem:[%s1817_s1 + $0x218] sm:$0xff]  ;;  %v492_v21 = vld [vmem:[%s1817_s1 + $0x3e8] sm:$0xff]  ;;  %v433_v23 = vld [vmem:[%s1817_s1 + $0x210] sm:$0xff] }
  0x33   : > { %546 = vmatmul.f32.gmra.mxu1 %v1348_v37  ;;  %534 = vmatmul.f32.gmra.mxu0 %v295_v40  ;;  %v1444_v16 = vld [vmem:[#allocation2 + $0x30] sm:$0xff]  ;;  %v474_v19 = vld [vmem:[%s1817_s1 + $0x358] sm:$0xff]  ;;  %v491_v26 = vld [vmem:[%s1817_s1 + $0x3e0] sm:$0xff] }
  0x34   : > { %560 = vmatpush.msrb.mxu1 %v394_v45  ;;  %683 = vmatpush.msrb.mxu0 %v442_v46  ;;  %v473_v25 = vld [vmem:[%s1817_s1 + $0x350] sm:$0xff]  ;;  %v384_v27 = vld [vmem:[%s1817_s1 + $0x88] sm:$0xff]  ;;  %v383_v30 = vld [vmem:[%s1817_s1 + $0x80] sm:$0xff] }
  0x35   : > { %762 = vmatpush.msrb.mxu2 %v477_v53  ;;  %802 = vmatpush.msrb.mxu3 %v494_v3  ;;  %v432_v28 = vld [vmem:[%s1817_s1 + $0x208] sm:$0xff]  ;;  %v1480_v29 = vld [vmem:[#allocation2 + $0x32] sm:$0xff]  ;;  %v431_v31 = vld [vmem:[%s1817_s1 + $0x200] sm:$0xff] }
  0x36   : > { %561 = vmatpush.msrb.mxu1 %v393_v50  ;;  %684 = vmatpush.msrb.mxu0 %v441_v51  ;;  %v302_v32 = vld [vmem:[#allocation2 + $0x1] sm:$0xff]  ;;  %v462_v34 = vld [vmem:[%s1817_s1 + $0x2f8] sm:$0xff]  ;;  %v461_v39 = vld [vmem:[%s1817_s1 + $0x2f0] sm:$0xff] }
  0x37   : > { %616 = vmatmul.f32.gmra.mxu2 %v1389_v58  ;;  %803 = vmatpush.msrb.mxu3 %v493_v8  ;;  %v472_v35 = vld [vmem:[%s1817_s1 + $0x348] sm:$0xff]  ;;  %v490_v36 = vld [vmem:[%s1817_s1 + $0x3d8] sm:$0xff]  ;;  %v471_v40 = vld [vmem:[%s1817_s1 + $0x340] sm:$0xff] }
  0x38   : > { %562 = vmatpush.msrb.mxu1 %v392_v55  ;;  %685 = vmatpush.msrb.mxu0 %v440_v57  ;;  %v1502_v38 = vld [vmem:[%s1817_s1 + $0x478] sm:$0xff]  ;;  %v489_v42 = vld [vmem:[%s1817_s1 + $0x3d0] sm:$0xff]  ;;  %v460_v44 = vld [vmem:[%s1817_s1 + $0x2e8] sm:$0xff] }
  0x39   : > { %763 = vmatpush.msrb.mxu2 %v476_v1  ;;  %657 = vmatmul.f32.gmra.mxu3 %v1399_v62  ;;  %v1517_v43 = vld [vmem:[%s1817_s1 + $0x470] sm:$0xff]  ;;  %v470_v45 = vld [vmem:[%s1817_s1 + $0x338] sm:$0xff]  ;;  %v1526_v46 = vld [vmem:[#allocation2 + $0x42] sm:$0xff] }
  0x3a   : > { %563 = vmatpush.msrb.mxu1 %v391_v59  ;;  %686 = vmatpush.msrb.mxu0 %v439_v60  ;;  %v459_v47 = vld [vmem:[%s1817_s1 + $0x2e0] sm:$0xff]  ;;  %v469_v48 = vld [vmem:[%s1817_s1 + $0x330] sm:$0xff]  ;;  %v458_v49 = vld [vmem:[%s1817_s1 + $0x2d8] sm:$0xff] }
  0x3b   : > { %549 = vmatmul.f32.gmra.mxu1 %v1397_v61  ;;  %537 = vmatmul.f32.gmra.mxu0 %v1399_v62  ;;  %v488_v50 = vld [vmem:[%s1817_s1 + $0x3c8] sm:$0xff]  ;;  %v457_v54 = vld [vmem:[%s1817_s1 + $0x2d0] sm:$0xff]  ;;  %v487_v55 = vld [vmem:[%s1817_s1 + $0x3c0] sm:$0xff] }
  0x3c   : > { %564 = vmatpush.msrb.mxu1 %v390_v63  ;;  %687 = vmatpush.msrb.mxu0 %v438_v0  ;;  %v468_v51 = vld [vmem:[%s1817_s1 + $0x328] sm:$0xff]  ;;  %v1559_v57 = vld [vmem:[#allocation2 + $0x52] sm:$0xff]  ;;  %v1567_v59 = vld [vmem:[%s1817_s1 + $0x460] sm:$0xff] }
  0x3d   : > { %764 = vmatpush.msrb.mxu2 %v475_v7  ;;  %804 = vmatpush.msrb.mxu3 %v492_v21  ;;  %v1549_v53 = vld [vmem:[%s1817_s1 + $0x468] sm:$0xff]  ;;  %v486_v63 = vld [vmem:[%s1817_s1 + $0x3b8] sm:$0xff]  ;;  %v237_v0 = vld [vmem:[%s1144_s8 + $0xe0] sm:$0xff] }
  0x3e   : > { %565 = vmatpush.msrb.mxu1 %v389_v5  ;;  %688 = vmatpush.msrb.mxu0 %v437_v6  ;;  %v456_v60 = vld [vmem:[%s1817_s1 + $0x2c8] sm:$0xff]  ;;  %v239_v3 = vld [vmem:[%s1144_s8 + $0xf0] sm:$0xff]  ;;  %v240_v5 = vld [vmem:[%s1144_s8 + $0xf8] sm:$0xff] }
  0x3f   : > { %619 = vmatmul.f32.gmra.mxu2 %v1434_v12  ;;  %805 = vmatpush.msrb.mxu3 %v491_v26  ;;  %v238_v1 = vld [vmem:[%s1144_s8 + $0xe8] sm:$0xff]  ;;  %v455_v6 = vld [vmem:[%s1817_s1 + $0x2c0] sm:$0xff]  ;;  %v466_v7 = vld [vmem:[%s1817_s1 + $0x318] sm:$0xff] }
  0x40   : > { %566 = vmatpush.msrb.mxu1 %v388_v9  ;;  %689 = vmatpush.msrb.mxu0 %v436_v10  ;;  %v255_v8 = vmax.f32 %v237_v0, %v238_v1  ;;  %v256_v9 = vmax.f32 %v239_v3, %v240_v5  ;;  %v454_v10 = vld [vmem:[%s1817_s1 + $0x2b8] sm:$0xff]  ;;  %v484_v21 = vld [vmem:[%s1817_s1 + $0x3a8] sm:$0xff]  ;;  %v483_v26 = vld [vmem:[%s1817_s1 + $0x3a0] sm:$0xff] }
  0x41   : > { %765 = vmatpush.msrb.mxu2 %v474_v19  ;;  %660 = vmatmul.f32.gmra.mxu3 %v1444_v16  ;;  %v453_v19 = vld [vmem:[%s1817_s1 + $0x2b0] sm:$0xff] }
  0x42   : > { %567 = vmatpush.msrb.mxu1 %v387_v13  ;;  %690 = vmatpush.msrb.mxu0 %v435_v14  ;;  %v485_v13 = vld [vmem:[%s1817_s1 + $0x3b0] sm:$0xff]  ;;  %v1595_v14 = vmax.f32 %v255_v8, %v256_v9 }
  0x43   : > { %552 = vmatmul.f32.gmra.mxu1 %v1442_v15  ;;  %540 = vmatmul.f32.gmra.mxu0 %v1444_v16 }
  0x44   : > { %568 = vmatpush.msrb.mxu1 %v386_v17  ;;  %691 = vmatpush.msrb.mxu0 %v434_v18  ;;  %v1600_v17 = vld [vmem:[%s1817_s1 + $0x458] sm:$0xff]  ;;  %v465_v18 = vld [vmem:[%s1817_s1 + $0x310] sm:$0xff]  ;;  %293 = vst [vmem:[#allocation2 + $0x81] sm:$0xff] %v1595_v14 }
  0x45   : > { %766 = vmatpush.msrb.mxu2 %v473_v25  ;;  %806 = vmatpush.msrb.mxu3 %v490_v36  ;;  %v452_v25 = vld [vmem:[%s1817_s1 + $0x2a8] sm:$0xff]  ;;  %v481_v36 = vld [vmem:[%s1817_s1 + $0x390] sm:$0xff] }
  0x46   : > { %569 = vmatpush.msrb.mxu1 %v385_v22  ;;  %692 = vmatpush.msrb.mxu0 %v433_v23  ;;  %v1617_v22 = vld [vmem:[%s1817_s1 + $0x450] sm:$0xff]  ;;  %v464_v23 = vld [vmem:[%s1817_s1 + $0x308] sm:$0xff] }
  0x47   : > { %622 = vmatmul.f32.gmra.mxu2 %v1480_v29  ;;  %807 = vmatpush.msrb.mxu3 %v489_v42  ;;  %v480_v42 = vld [vmem:[%s1817_s1 + $0x388] sm:$0xff] }
  0x48   : > { %570 = vmatpush.msrb.mxu1 %v384_v27  ;;  %693 = vmatpush.msrb.mxu0 %v432_v28  ;;  %v1629_v27 = vld [vmem:[#allocation2 + $0x62] sm:$0xff] }
  0x49   : > { %767 = vmatpush.msrb.mxu2 %v472_v35  ;;  %663 = vmatmul.f32.gmra.mxu3 %v1296_v11  ;;  %v504_v28 = vld [vmem:[%s1817_s1 + $0x448] sm:$0xff]  ;;  %v450_v35 = vld [vmem:[%s1817_s1 + $0x298] sm:$0xff] }
  0x4a   : > { %571 = vmatpush.msrb.mxu1 %v383_v30  ;;  %694 = vmatpush.msrb.mxu0 %v431_v31  ;;  %v451_v30 = vld [vmem:[%s1817_s1 + $0x2a0] sm:$0xff] }
  0x4b   : > { %572 = vmatmul.f32.vlgmr.msrb.gmra.mxu1 %v302_v32  ;;  %695 = vmatmul.f32.vlgmr.msrb.gmra.mxu0 %v1260_v56  ;;  %v463_v31 = vld [vmem:[%s1817_s1 + $0x300] sm:$0xff]  ;;  %v482_v32 = vld [vmem:[%s1817_s1 + $0x398] sm:$0xff] }
  0x4c   : > { %720 = vmatpush.msra.mxu1 %v462_v34  ;;  %843 = vmatpush.msra.mxu0 %v1502_v38  ;;  %v503_v34 = vld [vmem:[%s1817_s1 + $0x440] sm:$0xff] }
  0x4d   : > { %768 = vmatpush.msrb.mxu2 %v471_v40  ;;  %808 = vmatpush.msrb.mxu3 %v488_v50  ;;  %v449_v40 = vld [vmem:[%s1817_s1 + $0x290] sm:$0xff]  ;;  %v325_v50 = vld [vmem:[#allocation2 + $0x80] sm:$0xff] }
  0x4e   : > { %721 = vmatpush.msra.mxu1 %v461_v39  ;;  %844 = vmatpush.msra.mxu0 %v1517_v43  ;;  %v502_v39 = vld [vmem:[%s1817_s1 + $0x438] sm:$0xff] }
  0x4f   : > { %769 = vmatpush.msrb.mxu2 %v470_v45  ;;  %809 = vmatpush.msrb.mxu3 %v487_v55  ;;  %v501_v45 = vld [vmem:[%s1817_s1 + $0x430] sm:$0xff]  ;;  %v1070_v55 = vld [vmem:[%s1818_s2] ss:$0 sm:$0xff] }
  0x50   : > { %722 = vmatpush.msra.mxu1 %v460_v44  ;;  %625 = vmatmul.f32.gmra.mxu2 %v1526_v46  ;;  %v1666_v44 = vld [vmem:[#allocation2 + $0x72] sm:$0xff] }
  0x51   : > { %770 = vmatpush.msrb.mxu2 %v469_v48  ;;  %845 = vmatpush.msra.mxu0 %v1549_v53  ;;  %v500_v48 = vld [vmem:[%s1817_s1 + $0x428] sm:$0xff] }
  0x52   : > { %723 = vmatpush.msra.mxu1 %v459_v47  ;;  %810 = vmatpush.msrb.mxu3 %v486_v63  ;;  %v448_v47 = vld [vmem:[%s1817_s1 + $0x288] sm:$0xff] }
  0x53   : > { %575 = vmatmul.f32.gmra.mxu1 %v1260_v56  ;;  %698 = vmatmul.f32.gmra.mxu0 %v1312_v20  ;;  %v467_v56 = vld [vmem:[%s1817_s1 + $0x320] sm:$0xff] }
  0x54   : > { %724 = vmatpush.msra.mxu1 %v458_v49  ;;  %771 = vmatpush.msrb.mxu2 %v468_v51  ;;  %v447_v49 = vld [vmem:[%s1817_s1 + $0x280] sm:$0xff]  ;;  %v498_v51 = vld [vmem:[%s1817_s1 + $0x418] sm:$0xff] }
  0x55   : > { %846 = vmatpush.msra.mxu0 %v1567_v59  ;;  %666 = vmatmul.f32.gmra.mxu3 %v1348_v37 }
  0x56   : > { %725 = vmatpush.msra.mxu1 %v457_v54  ;;  %772 = vmatpush.msrb.mxu2 %v467_v56  ;;  %v496_v54 = vld [vmem:[%s1817_s1 + $0x408] sm:$0xff] }
  0x57   : > { %811 = vmatpush.msrb.mxu3 %v485_v13  ;;  %847 = vmatpush.msra.mxu0 %v1600_v17 }
  0x58   : > { %726 = vmatpush.msra.mxu1 %v456_v60  ;;  %628 = vmatmul.f32.gmra.mxu2 %v1559_v57 }
  0x59   : > { %773 = vmatpush.msrb.mxu2 %v466_v7  ;;  %812 = vmatpush.msrb.mxu3 %v484_v21 }
  0x5a   : > { %727 = vmatpush.msra.mxu1 %v455_v6  ;;  %848 = vmatpush.msra.mxu0 %v1617_v22 }
  0x5b   : > { %578 = vmatmul.f32.gmra.mxu1 %v1312_v20  ;;  %701 = vmatmul.f32.gmra.mxu0 %v1374_v52 }
  0x5c   : > { %728 = vmatpush.msra.mxu1 %v454_v10  ;;  %774 = vmatpush.msrb.mxu2 %v465_v18 }
  0x5d   : > { %813 = vmatpush.msrb.mxu3 %v483_v26  ;;  %849 = vmatpush.msra.mxu0 %v504_v28 }
  0x5e   : > { %729 = vmatpush.msra.mxu1 %v453_v19  ;;  %775 = vmatpush.msrb.mxu2 %v464_v23 }
  0x5f   : > { %669 = vmatmul.f32.gmra.mxu3 %v1397_v61  ;;  %850 = vmatpush.msra.mxu0 %v503_v34 }
  0x60   : > { %730 = vmatpush.msra.mxu1 %v452_v25  ;;  %631 = vmatmul.f32.gmra.mxu2 %v1629_v27 }
  0x61   : > { %776 = vmatpush.msrb.mxu2 %v463_v31  ;;  %814 = vmatpush.msrb.mxu3 %v482_v32 }
  0x62   : > { %731 = vmatpush.msra.mxu1 %v451_v30  ;;  %851 = vmatpush.msra.mxu0 %v502_v39 }
  0x63   : > { %581 = vmatmul.f32.gmra.mxu1 %v1374_v52  ;;  %704 = vmatmul.f32.gmra.mxu0 %v1187_v24 }
  0x64   : > { %732 = vmatpush.msra.mxu1 %v450_v35  ;;  %1045 = vmatpush.msra.mxu2 %v1502_v38  ;;  %v479_v38 = vld [vmem:[%s1817_s1 + $0x380] sm:$0xff] }
  0x65   : > { %815 = vmatpush.msrb.mxu3 %v481_v36  ;;  %852 = vmatpush.msra.mxu0 %v501_v45 }
  0x66   : > { %733 = vmatpush.msra.mxu1 %v449_v40  ;;  %1046 = vmatpush.msra.mxu2 %v1517_v43  ;;  %v499_v43 = vld [vmem:[%s1817_s1 + $0x420] sm:$0xff] }
  0x67   : > { %816 = vmatpush.msrb.mxu3 %v480_v42  ;;  %853 = vmatpush.msra.mxu0 %v500_v48 }
  0x68   : > { %634 = vmatmul.f32.gmra.mxu2 %v1666_v44  ;;  %672 = vmatmul.f32.gmra.mxu3 %v1442_v15 }
  0x69   : > { %734 = vmatpush.msra.mxu1 %v448_v47  ;;  %1047 = vmatpush.msra.mxu2 %v1549_v53  ;;  %v497_v53 = vld [vmem:[%s1817_s1 + $0x410] sm:$0xff] }
  0x6a   : > { %817 = vmatpush.msrb.mxu3 %v479_v38  ;;  %854 = vmatpush.msra.mxu0 %v499_v43 }
  0x6b   : > { %584 = vmatmul.f32.gmra.mxu1 %v1187_v24  ;;  %707 = vmatmul.f32.gmra.mxu0 %v1230_v41 }
  0x6c   : > { %735 = vmatpush.msra.mxu1 %v447_v49  ;;  %1048 = vmatpush.msra.mxu2 %v1567_v59 }
  0x6d   : > { %855 = vmatpush.msra.mxu0 %v498_v51 }
  0x6e   : > { %1049 = vmatpush.msra.mxu2 %v1600_v17 }
  0x6f   : > { %856 = vmatpush.msra.mxu0 %v497_v53 }
  0x70   : > { %777 = vmatmul.f32.vlgmr.msrb.gmra.mxu2 %v1399_v62  ;;  %675 = vmatmul.f32.gmra.mxu3 %v325_v50  ;;  %v495_v62 = vld [vmem:[%s1817_s1 + $0x400] sm:$0xff] }
  0x71   : > { %1050 = vmatpush.msra.mxu2 %v1617_v22  ;;  %857 = vmatpush.msra.mxu0 %v496_v54 }
  0x73   : > { %587 = vmatmul.f32.gmra.mxu1 %v1230_v41  ;;  %710 = vmatmul.f32.gmra.mxu0 %v1283_v4 }
  0x74   : > { %1051 = vmatpush.msra.mxu2 %v504_v28  ;;  %858 = vmatpush.msra.mxu0 %v495_v62 }
  0x76   : > { %1052 = vmatpush.msra.mxu2 %v503_v34 }
  0x78   : > { %1053 = vmatpush.msra.mxu2 %v502_v39  ;;  %818 = vmatmul.f32.vlgmr.msrb.gmra.mxu3 %v1312_v20 }
  0x79   : > { %780 = vmatmul.f32.gmra.mxu2 %v1444_v16 }
  0x7a   : > { %1054 = vmatpush.msra.mxu2 %v501_v45 }
  0x7b   : > { %590 = vmatmul.f32.gmra.mxu1 %v1283_v4  ;;  %713 = vmatmul.f32.gmra.mxu0 %v1340_v33 }
  0x7c   : > { %1055 = vmatpush.msra.mxu2 %v500_v48 }
  0x7e   : > { %1056 = vmatpush.msra.mxu2 %v499_v43 }
  0x80   : > { %1057 = vmatpush.msra.mxu2 %v498_v51  ;;  %821 = vmatmul.f32.gmra.mxu3 %v1374_v52  ;;  %v366_v52 = vld [vmem:[#allocation2 + $0x92] sm:$0xff] }
  0x81   : > { %783 = vmatmul.f32.gmra.mxu2 %v1296_v11  ;;  %v358_v11 = vld [vmem:[#allocation2 + $0x91] sm:$0xff] }
  0x82   : > { %1058 = vmatpush.msra.mxu2 %v497_v53 }
  0x83   : > { %593 = vmatmul.f32.gmra.mxu1 %v1340_v33  ;;  %716 = vmatmul.f32.gmra.mxu0 %v1595_v14 }
  0x84   : > { %1059 = vmatpush.msra.mxu2 %v496_v54 }
  0x86   : > { %1060 = vmatpush.msra.mxu2 %v495_v62 }
  0x88   : > { %824 = vmatmul.f32.gmra.mxu3 %v1187_v24 }
  0x89   : > { %786 = vmatmul.f32.gmra.mxu2 %v1348_v37 }
  0x8b   : > { %736 = vmatmul.f32.vlgmr.msra.gmra.mxu1 %v1389_v58  ;;  %859 = vmatmul.f32.vlgmr.msra.gmra.mxu0 %v1434_v12 }
  0x90   : > { %827 = vmatmul.f32.gmra.mxu3 %v1230_v41 }
  0x91   : > { %789 = vmatmul.f32.gmra.mxu2 %v1397_v61 }
  0x93   : > { %739 = vmatmul.f32.gmra.mxu1 %v1434_v12  ;;  %862 = vmatmul.f32.gmra.mxu0 %v1480_v29 }
  0x98   : > { %830 = vmatmul.f32.gmra.mxu3 %v1283_v4  ;;  %v365_v4 = vld [vmem:[#allocation2 + $0x82] sm:$0xff] }
  0x99   : > { %792 = vmatmul.f32.gmra.mxu2 %v1442_v15 }
  0x9b   : > { %742 = vmatmul.f32.gmra.mxu1 %v1480_v29  ;;  %865 = vmatmul.f32.gmra.mxu0 %v1526_v46 }
  0xa0   : > { %833 = vmatmul.f32.gmra.mxu3 %v1340_v33 }
  0xa1   : > { %795 = vmatmul.f32.gmra.mxu2 %v325_v50 }
  0xa3   : > { %745 = vmatmul.f32.gmra.mxu1 %v1526_v46  ;;  %868 = vmatmul.f32.gmra.mxu0 %v1559_v57 }
  0xa8   : > { %v544_v24 = vpop.f32.mrf.mxu1  ;;  %v532_v41 = vpop.f32.mrf.mxu0  ;;  %836 = vmatmul.f32.gmra.mxu3 %v1595_v14 }
  0xa9   : > { %798 = vmatmul.f32.gmra.mxu2 %v1079_v2  ;;  %v545_v32 = vadd.f32 %v1070_v55, %v544_v24 }
  0xab   : > { %748 = vmatmul.f32.gmra.mxu1 %v1559_v57  ;;  %871 = vmatmul.f32.gmra.mxu0 %v1629_v27  ;;  %v533_v57 = vadd.f32 %v1070_v55, %v532_v41 }
  0xb0   : > { %v547_v20 = vpop.f32.mrf.mxu1  ;;  %v535_v37 = vpop.f32.mrf.mxu0  ;;  %839 = vmatmul.f32.gmra.mxu3 %v358_v11 }
  0xb1   : > { %877 = vmatmul.f32.vlgmr.msra.gmra.mxu2 %v365_v4  ;;  %v536_v3 = vadd.f32 %v1070_v55, %v535_v37 }
  0xb2   : > { %v614_v33 = vpop.f32.mrf.mxu2 }
  0xb3   : > { %751 = vmatmul.f32.gmra.mxu1 %v1629_v27  ;;  %874 = vmatmul.f32.gmra.mxu0 %v1666_v44 }
  0xb4   : > { %v655_v12 = vpop.f32.mrf.mxu3 }
  0xb8   : > { %v550_v58 = vpop.f32.mrf.mxu1  ;;  %v538_v2 = vpop.f32.mrf.mxu0 }
  0xb9   : > { %880 = vmatmul.f32.gmra.mxu2 %v366_v52  ;;  %v539_v13 = vadd.f32 %v1070_v55, %v538_v2  ;;  %v551_v50 = vadd.f32 %v1070_v55, %v550_v58 }
  0xba   : > { %v617_v61 = vpop.f32.mrf.mxu2 }
  0xbb   : > { %754 = vmatmul.f32.gmra.mxu1 %v1666_v44  ;;  %v548_v44 = vadd.f32 %v1070_v55, %v547_v20 }
  0xbc   : > { %v1741_v46 = vpop.f32.mrf.mxu3 }
  0xc0   : > { %v553_v15 = vpop.f32.mrf.mxu1  ;;  %v541_v16 = vpop.f32.mrf.mxu0 }
  0xc1   : > { %v542_v23 = vadd.f32 %v1070_v55, %v541_v16 }
  0xc2   : > { %v620_v29 = vpop.f32.mrf.mxu2 }
  0xc3   : > { %757 = vmatmul.f32.gmra.mxu1 %v365_v4  ;;  %v554_v4 = vadd.f32 %v1070_v55, %v553_v15 }
  0xc4   : > { %v1746_v1 = vpop.f32.mrf.mxu3 }
  0xc8   : > { %v573_v56 = vpop.f32.mrf.mxu1  ;;  %v696_v59 = vpop.f32.mrf.mxu0 }
  0xc9   : > { %v574_v60 = vadd.f32 %v573_v56, %v533_v57 }
  0xca   : > { %v623_v0 = vpop.f32.mrf.mxu2 }
  0xcb   : > { %v615_v63 = vadd.f32 %v614_v33, %v574_v60 }
  0xcc   : > { %v1748_v10 = vpop.f32.mrf.mxu3 }
  0xcd   : > { %v656_v33 = vadd.f32 %v655_v12, %v615_v63 }
  0xcf   : > { %v697_v58 = vadd.f32 %v696_v59, %v656_v33 }
  0xd0   : > { %v576_v5 = vpop.f32.mrf.mxu1  ;;  %v699_v6 = vpop.f32.mrf.mxu0 }
  0xd1   : > { %v577_v7 = vadd.f32 %v576_v5, %v536_v3 }
  0xd3   : > { %v618_v8 = vadd.f32 %v617_v61, %v577_v7  ;;  %v626_v9 = vpop.f32.mrf.mxu2 }
  0xd5   : > { %v659_v56 = vadd.f32 %v1741_v46, %v618_v8 }
  0xd7   : > { %v700_v12 = vadd.f32 %v699_v6, %v659_v56 }
  0xd8   : > { %v579_v14 = vpop.f32.mrf.mxu1  ;;  %v702_v17 = vpop.f32.mrf.mxu0 }
  0xd9   : > { %v580_v18 = vadd.f32 %v579_v14, %v539_v13  ;;  %v1750_v22 = vpop.f32.mrf.mxu3 }
  0xdb   : > { %v621_v19 = vadd.f32 %v620_v29, %v580_v18  ;;  %v629_v21 = vpop.f32.mrf.mxu2 }
  0xdd   : > { %v662_v46 = vadd.f32 %v1746_v1, %v621_v19 }
  0xdf   : > { %v703_v13 = vadd.f32 %v702_v17, %v662_v46 }
  0xe0   : > { %v582_v25 = vpop.f32.mrf.mxu1  ;;  %v1752_v26 = vpop.f32.mrf.mxu0 }
  0xe1   : > { %v583_v27 = vadd.f32 %v582_v25, %v542_v23 }
  0xe2   : > { %v1756_v31 = vpop.f32.mrf.mxu3 }
  0xe3   : > { %v1754_v28 = vadd.f32 %v623_v0, %v583_v27  ;;  %v632_v30 = vpop.f32.mrf.mxu2 }
  0xe8   : > { %v585_v34 = vpop.f32.mrf.mxu1  ;;  %v1758_v35 = vpop.f32.mrf.mxu0 }
  0xe9   : > { %v586_v36 = vadd.f32 %v585_v34, %v545_v32  ;;  %v665_v32 = vadd.f32 %v1748_v10, %v1754_v28 }
  0xeb   : > { %v1760_v39 = vadd.f32 %v626_v9, %v586_v36  ;;  %v635_v40 = vpop.f32.mrf.mxu2  ;;  %v1762_v42 = vpop.f32.mrf.mxu3 }
  0xf0   : > { %v588_v45 = vpop.f32.mrf.mxu1  ;;  %v1764_v47 = vpop.f32.mrf.mxu0 }
  0xf1   : > { %v589_v38 = vadd.f32 %v588_v45, %v548_v44 }
  0xf3   : > { %v1766_v48 = vadd.f32 %v629_v21, %v589_v38  ;;  %v778_v49 = vpop.f32.mrf.mxu2  ;;  %v1768_v43 = vpop.f32.mrf.mxu3 }
  0xf8   : > { %v591_v51 = vpop.f32.mrf.mxu1  ;;  %v1770_v53 = vpop.f32.mrf.mxu0 }
  0xf9   : > { %v592_v54 = vadd.f32 %v591_v51, %v551_v50  ;;  %v668_v51 = vadd.f32 %v1750_v22, %v1760_v39 }
  0xfb   : > { %v1772_v62 = vadd.f32 %v632_v30, %v592_v54  ;;  %v819_v41 = vpop.f32.mrf.mxu3 }
  0xfc   : > { %v781_v24 = vpop.f32.mrf.mxu2 }
 0x100   : > { %v594_v11 = vpop.f32.mrf.mxu1  ;;  %v1774_v20 = vpop.f32.mrf.mxu0 }
 0x101   : > { %v595_v37 = vadd.f32 %v594_v11, %v554_v4  ;;  %v709_v4 = vadd.f32 %v1758_v35, %v668_v51 }
 0x103   : > { %v1776_v52 = vadd.f32 %v635_v40, %v595_v37  ;;  %v822_v61 = vpop.f32.mrf.mxu3  ;;  %v706_v40 = vadd.f32 %v1752_v26, %v665_v32 }
 0x104   : > { %v784_v2 = vpop.f32.mrf.mxu2 }
 0x108   : > { %v737_v16 = vpop.f32.mrf.mxu1  ;;  %v860_v29 = vpop.f32.mrf.mxu0 }
 0x109   : > { %v738_v57 = vadd.f32 %v737_v16, %v697_v58  ;;  %v671_v58 = vadd.f32 %v1756_v31, %v1766_v48 }
 0x10b   : > { %v779_v60 = vadd.f32 %v778_v49, %v738_v57  ;;  %v825_v55 = vpop.f32.mrf.mxu3  ;;  %v712_v57 = vadd.f32 %v1764_v47, %v671_v58 }
 0x10c   : > { %v787_v0 = vpop.f32.mrf.mxu2 }
 0x10d   : > { %v820_v3 = vadd.f32 %v819_v41, %v779_v60 }
 0x10f   : > { %v861_v15 = vadd.f32 %v860_v29, %v820_v3 }
 0x110   : > { %v740_v59 = vpop.f32.mrf.mxu1  ;;  %v863_v63 = vpop.f32.mrf.mxu0 }
 0x111   : > { %884 = vst [vmem:[%s1783_s9] sm:$0xff] %v861_v15  ;;  %v741_v5 = vadd.f32 %v740_v59, %v700_v12  ;;  %v905_v23 = vmul.f32 %v861_v15, %v861_v15 }
 0x113   : > { %v782_v7 = vadd.f32 %v781_v24, %v741_v5  ;;  %v828_v30 = vpop.f32.mrf.mxu3 }
 0x114   : > { %v790_v8 = vpop.f32.mrf.mxu2 }
 0x115   : > { %v823_v9 = vadd.f32 %v822_v61, %v782_v7 }
 0x117   : > { %v864_v14 = vadd.f32 %v863_v63, %v823_v9 }
 0x118   : > { %v743_v18 = vpop.f32.mrf.mxu1  ;;  %v866_v21 = vpop.f32.mrf.mxu0 }
 0x119   : > { %885 = vst [vmem:[%s1783_s9 + $0x8] sm:$0xff] %v864_v14  ;;  %v892_v6 = vadd.f32 %v864_v14, %v861_v15  ;;  %v906_v25 = vmul.f32 %v864_v14, %v864_v14  ;;  %v744_v27 = vadd.f32 %v743_v18, %v703_v13  ;;  %v674_v15 = vadd.f32 %v1762_v42, %v1772_v62 }
 0x11a   : > { %v677_v14 = vadd.f32 %v1768_v43, %v1776_v52 }
 0x11b   : > { %v913_v34 = vadd.f32 %v906_v25, %v905_v23  ;;  %v785_v36 = vadd.f32 %v784_v2, %v744_v27  ;;  %v831_v10 = vpop.f32.mrf.mxu3  ;;  %v715_v63 = vadd.f32 %v1770_v53, %v674_v15 }
 0x11c   : > { %v793_v1 = vpop.f32.mrf.mxu2 }
 0x11d   : > { %v826_v19 = vadd.f32 %v825_v55, %v785_v36 }
 0x11f   : > { %v867_v17 = vadd.f32 %v866_v21, %v826_v19  ;;  %v718_v21 = vadd.f32 %v1774_v20, %v677_v14 }
 0x120   : > { %v746_v44 = vpop.f32.mrf.mxu1  ;;  %v869_v45 = vpop.f32.mrf.mxu0 }
 0x121   : > { %886 = vst [vmem:[%s1783_s9 + $0x10] sm:$0xff] %v867_v17  ;;  %v893_v38 = vadd.f32 %v892_v6, %v867_v17  ;;  %v907_v49 = vmul.f32 %v867_v17, %v867_v17  ;;  %v747_v50 = vadd.f32 %v746_v44, %v706_v40 }
 0x123   : > { %v914_v54 = vadd.f32 %v913_v34, %v907_v49  ;;  %v788_v24 = vadd.f32 %v787_v0, %v747_v50  ;;  %v834_v29 = vpop.f32.mrf.mxu3 }
 0x124   : > { %v796_v41 = vpop.f32.mrf.mxu2 }
 0x125   : > { %v829_v28 = vadd.f32 %v828_v30, %v788_v24 }
 0x127   : > { %v870_v11 = vadd.f32 %v869_v45, %v829_v28 }
 0x128   : > { %v749_v26 = vpop.f32.mrf.mxu1  ;;  %v872_v61 = vpop.f32.mrf.mxu0 }
 0x129   : > { %887 = vst [vmem:[%s1783_s9 + $0x18] sm:$0xff] %v870_v11  ;;  %v894_v37 = vadd.f32 %v893_v38, %v870_v11  ;;  %v908_v33 = vmul.f32 %v870_v11, %v870_v11  ;;  %v750_v2 = vadd.f32 %v749_v26, %v709_v4 }
 0x12b   : > { %v915_v16 = vadd.f32 %v914_v54, %v908_v33  ;;  %v791_v22 = vadd.f32 %v790_v8, %v750_v2  ;;  %v837_v46 = vpop.f32.mrf.mxu3 }
 0x12c   : > { %v799_v60 = vpop.f32.mrf.mxu2 }
 0x12d   : > { %v832_v39 = vadd.f32 %v831_v10, %v791_v22 }
 0x12f   : > { %v873_v56 = vadd.f32 %v872_v61, %v832_v39 }
 0x130   : > { %v752_v35 = vpop.f32.mrf.mxu1  ;;  %v875_v31 = vpop.f32.mrf.mxu0 }
 0x131   : > { %888 = vst [vmem:[%s1783_s9 + $0x20] sm:$0xff] %v873_v56  ;;  %v895_v0 = vadd.f32 %v894_v37, %v873_v56  ;;  %v909_v3 = vmul.f32 %v873_v56, %v873_v56  ;;  %v753_v12 = vadd.f32 %v752_v35, %v712_v57 }
 0x133   : > { %v916_v55 = vadd.f32 %v915_v16, %v909_v3  ;;  %v794_v59 = vadd.f32 %v793_v1, %v753_v12  ;;  %v840_v30 = vpop.f32.mrf.mxu3 }
 0x134   : > { %v878_v13 = vpop.f32.mrf.mxu2 }
 0x135   : > { %v835_v48 = vadd.f32 %v834_v29, %v794_v59 }
 0x137   : > { %v876_v5 = vadd.f32 %v875_v31, %v835_v48 }
 0x138   : > { %v755_v47 = vpop.f32.mrf.mxu1 }
 0x139   : > { %889 = vst [vmem:[%s1783_s9 + $0x28] sm:$0xff] %v876_v5  ;;  %v896_v7 = vadd.f32 %v895_v0, %v876_v5  ;;  %v910_v8 = vmul.f32 %v876_v5, %v876_v5  ;;  %v756_v9 = vadd.f32 %v755_v47, %v715_v63 }
 0x13b   : > { %v917_v18 = vadd.f32 %v916_v55, %v910_v8  ;;  %v797_v42 = vadd.f32 %v796_v41, %v756_v9 }
 0x13c   : > { %v881_v36 = vpop.f32.mrf.mxu2 }
 0x13d   : > { %v838_v62 = vadd.f32 %v837_v46, %v797_v42 }
 0x13f   : > { %v879_v23 = vadd.f32 %v878_v13, %v838_v62 }
 0x140   : > { %v758_v53 = vpop.f32.mrf.mxu1 }
 0x141   : > { %890 = vst [vmem:[%s1783_s9 + $0x30] sm:$0xff] %v879_v23  ;;  %v897_v6 = vadd.f32 %v896_v7, %v879_v23  ;;  %v911_v25 = vmul.f32 %v879_v23, %v879_v23  ;;  %v759_v27 = vadd.f32 %v758_v53, %v718_v21 }
 0x143   : > { %v918_v32 = vadd.f32 %v917_v18, %v911_v25  ;;  %v800_v34 = vadd.f32 %v799_v60, %v759_v27 }
 0x145   : > { %v841_v1 = vadd.f32 %v840_v30, %v800_v34 }
 0x147   : > { %v882_v19 = vadd.f32 %v881_v36, %v841_v1 }
 0x149   : > { %891 = vst [vmem:[%s1783_s9 + $0x38] sm:$0xff] %v882_v19  ;;  %v898_v43 = vadd.f32 %v897_v6, %v882_v19  ;;  %v912_v52 = vmul.f32 %v882_v19, %v882_v19 }
 0x14b   : > { %v899_v40 = vrot.slane %v898_v43, 4  ;;  %v919_v17 = vadd.f32 %v918_v32, %v912_v52 }
 0x14d   : > { %v900_v44 = vadd.f32 %v899_v40, %v898_v43  ;;  %v920_v20 = vrot.slane %v919_v17, 4 }
 0x14f   : > { %v901_v45 = vrot.slane %v900_v44, 2  ;;  %v921_v38 = vadd.f32 %v920_v20, %v919_v17 }
 0x151   : > { %v902_v49 = vadd.f32 %v901_v45, %v900_v44  ;;  %v922_v50 = vrot.slane %v921_v38, 2 }
 0x153   : > { %v903_v51 = vrot.slane %v902_v49, 1  ;;  %v923_v54 = vadd.f32 %v922_v50, %v921_v38 }
 0x155   : > { %v924_v24 = vrot.slane %v923_v54, 1  ;;  %v904_v10 = vadd.f32 %v903_v51, %v902_v49 }
 0x157   : > { %v925_v28 = vadd.f32 %v924_v24, %v923_v54 }
 0x159   : > { %v927_v41 = vsel %vm926_vm0, %v904_v10, %v925_v28 }
 0x15a   : > { %928 = vst [vmem:[%s208_s13] sm:$0x3] %v927_v41 }
 0x15b PF: > { %s15_s15 = sadd.s32 1, %s1077_s15  }
 0x15c   : > { %p12_p4 = scmp.ge.s32.totalorder %s15_s15, 4  }
 0x15e   :  { %14 = sbr.rel (!%p12_p4) target bundleno = 1 (0x1), region = 76 }

</bundles_post_ra>
